<compile_context>
chip_gen: v5e
topology: v5e:2x2
jax: 0.10.0
libtpu: 0.0.40
codegen_flags: <defaults>
</compile_context>

<pallas_src>
import functools

import jax
import jax.numpy as jnp
from jax import lax
from jax.experimental import pallas as pl
from jax.experimental.pallas import tpu as pltpu

# ---------------------------------------------------------------------------
# Configuration (small synthetic shapes consistent with the module)
# ---------------------------------------------------------------------------
N = 8              # batch
C_IN = 4           # input channels
H = W = 16         # spatial
HID = 32           # encoder hidden width (logical)
DIM = 128          # MoCo feature dim
K = 512            # queue size (K % batch == 0, as asserted in _dequeue_and_enqueue)
EXTRA_K = 128      # extra_sample_K
T = 0.07           # temperature
M = 0.999          # key-encoder momentum
TEACHER_M = 0.996  # teacher momentum (update_teacher is never called inside forward)

CP = 9 * C_IN      # raw im2col feature width (36)
CP_PAD = 128       # lane-dense padded contraction dim (zero pad -> exact numerics)
HID_PAD = 128      # lane-dense padded conv width
QUEUE_TILE = 2048  # max queue rows resident per grid step in the contrastive kernel

_PARAM_NAMES = ("wconv", "bconv", "wfc", "bfc")


def _full_spec(shape):
    nd = len(shape)
    return pl.BlockSpec(shape, lambda *_: (0,) * nd)


# ---------------------------------------------------------------------------
# Pallas kernels
# ---------------------------------------------------------------------------
def _encoder_kernel(patches_ref, wconv_ref, bconv_ref, wfc_ref, bfc_ref, out_ref):
    # grid axis 0 selects the weight set (enc_q / teacher); patches are shared.
    n = out_ref.shape[1]
    hw = patches_ref.shape[0] // n
    h = jnp.dot(patches_ref[...], wconv_ref[0], preferred_element_type=jnp.float32)
    h = jnp.maximum(h + bconv_ref[0], 0.0)                        # (n*hw, HID_PAD)
    pooled = jnp.mean(h.reshape(n, hw, h.shape[1]), axis=1)       # global avg pool
    feat = jnp.dot(pooled, wfc_ref[0], preferred_element_type=jnp.float32) + bfc_ref[0]
    ssq = jnp.sum(feat * feat, axis=1, keepdims=True)
    out_ref[0] = feat * lax.rsqrt(jnp.maximum(ssq, 1e-24))        # F.normalize(dim=1)


def _ema_k_encoder_kernel(patches_ref, wq_c, bq_c, wq_f, bq_f,
                          wk_c, bk_c, wk_f, bk_f,
                          k_ref, wo_c, bo_c, wo_f, bo_f, *, m):
    # fused: param_k = m*param_k + (1-m)*param_q, then k = normalize(enc_k(im_k))
    wc = wk_c[...] * m + wq_c[...] * (1.0 - m)
    bc = bk_c[...] * m + bq_c[...] * (1.0 - m)
    wf = wk_f[...] * m + wq_f[...] * (1.0 - m)
    bf = bk_f[...] * m + bq_f[...] * (1.0 - m)
    wo_c[...] = wc
    bo_c[...] = bc
    wo_f[...] = wf
    bo_f[...] = bf
    n = k_ref.shape[0]
    hw = patches_ref.shape[0] // n
    h = jnp.maximum(
        jnp.dot(patches_ref[...], wc, preferred_element_type=jnp.float32) + bc, 0.0)
    pooled = jnp.mean(h.reshape(n, hw, h.shape[1]), axis=1)
    feat = jnp.dot(pooled, wf, preferred_element_type=jnp.float32) + bf
    ssq = jnp.sum(feat * feat, axis=1, keepdims=True)
    k_ref[...] = feat * lax.rsqrt(jnp.maximum(ssq, 1e-24))


def _logits_ce_kernel(q_ref, k_ref, queue_ref, extra_ref,
                      lpos_ref, lneg_ref, ce_ref, *, inv_t):
    # queue rows are streamed over grid axis 0 (lneg block index follows along)
    dn = (((1,), (1,)), ((), ()))
    q = q_ref[...]
    lneg_ref[...] = lax.dot_general(q, queue_ref[...], dn,
                                    preferred_element_type=jnp.float32) * inv_t

    @pl.when(pl.program_id(0) == 0)
    def _():
        l_pos = jnp.sum(q * k_ref[...], axis=1, keepdims=True) * inv_t       # (n,1)
        lpos_ref[...] = l_pos
        # extra-sample CrossEntropy(label=0) without materialising the concat
        l_nx = lax.dot_general(q, extra_ref[...], dn,
                               preferred_element_type=jnp.float32) * inv_t   # (n,EXTRA_K)
        mx = jnp.maximum(l_pos, jnp.max(l_nx, axis=1, keepdims=True))
        lse = jnp.log(jnp.exp(l_pos - mx) +
                      jnp.sum(jnp.exp(l_nx - mx), axis=1, keepdims=True)) + mx
        ce_ref[0] = jnp.mean(lse - l_pos)


def _distill_kl_kernel(q_ref, sa_ref, tq_ref, ta_ref, mrow_ref, mcol_ref, out_ref):
    # masked-similarity KL (batchmean over the is_from_old rows / columns), f32 only
    dn = (((1,), (1,)), ((), ()))
    mcol = mcol_ref[...]                                     # (1, n)
    mrow = mrow_ref[...]                                     # (n, 1)
    col_bias = (1.0 - mcol) * (-1e30)
    s = lax.dot_general(q_ref[...], sa_ref[...], dn,
                        preferred_element_type=jnp.float32) * (1.0 / 0.07) + col_bias
    t = lax.dot_general(tq_ref[...], ta_ref[...], dn,
                        preferred_element_type=jnp.float32) * (1.0 / 0.04) + col_bias

    def _log_softmax(x):
        mx = jnp.max(x, axis=1, keepdims=True)
        z = x - mx
        return z - jnp.log(jnp.sum(jnp.exp(z), axis=1, keepdims=True))

    log_s = _log_softmax(s)
    log_t = _log_softmax(t)
    p_t = jnp.exp(log_t)
    elem = jnp.where(mcol > 0.5, p_t * (log_t - log_s), 0.0)
    row_kl = jnp.sum(elem, axis=1, keepdims=True)            # (n,1)
    total = jnp.sum(mrow * row_kl)                           # 0 when no old rows
    n_old = jnp.sum(mrow)
    out_ref[0] = total / jnp.maximum(n_old, 1.0)


def _extra_enqueue_kernel(ptr_ref, mcol_ref, mrow_ref, keys_ref, extra_ref, out_ref):
    # circular write of the is_from_old rows of `keys` starting at ptr, expressed as a
    # one-hot scatter matrix (stays on the VPU/MXU, no host sync / data-dep slicing)
    mcol = mcol_ref[...]                                     # (1, n)
    mrow = mrow_ref[...]                                     # (n, 1)
    nn = mcol.shape[1]
    ek = out_ref.shape[0]
    p1 = ptr_ref[0].astype(jnp.float32)
    # inclusive prefix count of selected rows; exact small ints in f32
    tri = (lax.broadcasted_iota(jnp.int32, (nn, nn), 0)
           <= lax.broadcasted_iota(jnp.int32, (nn, nn), 1)).astype(jnp.float32)
    counts = jnp.sum(mrow * tri, axis=0, keepdims=True)      # (1, n)
    pos = p1 + counts - 1.0
    pos = jnp.where(pos >= float(ek), pos - float(ek), pos)  # single wrap: n <= EXTRA_K
    rows = lax.broadcasted_iota(jnp.int32, (ek, nn), 0).astype(jnp.float32)
    w = jnp.where((rows == pos) & (mcol > 0.5), 1.0, 0.0)    # (ek, n) one-hot scatter
    covered = jnp.sum(w, axis=1, keepdims=True)              # (ek, 1)
    out_ref[...] = (extra_ref[...] * (1.0 - covered) +
                    jnp.dot(w, keys_ref[...], preferred_element_type=jnp.float32))
    # TODO(synk): at realistic EXTRA_K, compact the selected rows and DMA a slab
    # instead of rewriting the whole extra queue block.


# ---------------------------------------------------------------------------
# Thin wrappers around pallas_call
# ---------------------------------------------------------------------------
def _im2col_padded(x_nchw):
    # layout glue: NCHW -> NHWC -> 3x3 same-pad im2col rows, zero-padded to CP_PAD
    x = jnp.transpose(x_nchw, (0, 2, 3, 1)).astype(jnp.float32)
    n, h, w, c = x.shape
    xp = jnp.pad(x, ((0, 0), (1, 1), (1, 1), (0, 0)))
    cols = [xp[:, dh:dh + h, dw:dw + w, :] for dh in range(3) for dw in range(3)]
    patches = jnp.concatenate(cols, axis=-1).reshape(n * h * w, 9 * c)
    patches = jnp.pad(patches, ((0, 0), (0, CP_PAD - 9 * c)))
    return patches, n, h * w


def encoder_forward_multi(patches, n, params_list):
    # one pallas_call; grid axis selects the weight set (enc_q / teacher / ...)
    g = len(params_list)
    wconv = jnp.stack([p["wconv"] for p in params_list])      # (g, CP_PAD, HID_PAD)
    bconv = jnp.stack([p["bconv"] for p in params_list])      # (g, 1, HID_PAD)
    wfc = jnp.stack([p["wfc"] for p in params_list])          # (g, HID_PAD, DIM)
    bfc = jnp.stack([p["bfc"] for p in params_list])          # (g, 1, DIM)
    return pl.pallas_call(
        _encoder_kernel,
        out_shape=jax.ShapeDtypeStruct((g, n, DIM), jnp.float32),
        grid=(g,),
        in_specs=[
            pl.BlockSpec(patches.shape, lambda i: (0, 0)),
            pl.BlockSpec((1, CP_PAD, HID_PAD), lambda i: (i, 0, 0)),
            pl.BlockSpec((1, 1, HID_PAD), lambda i: (i, 0, 0)),
            pl.BlockSpec((1, HID_PAD, DIM), lambda i: (i, 0, 0)),
            pl.BlockSpec((1, 1, DIM), lambda i: (i, 0, 0)),
        ],
        out_specs=pl.BlockSpec((1, n, DIM), lambda i: (i, 0, 0)),
        compiler_params=pltpu.CompilerParams(dimension_semantics=("parallel",)),
    )(patches, wconv, bconv, wfc, bfc)


def ema_and_k_forward(im_k, enc_q, enc_k, m):
    # fused momentum update + key-encoder forward (one launch, no weight round trip)
    patches, n, _ = _im2col_padded(im_k)
    p_shapes = [enc_q[nm].shape for nm in _PARAM_NAMES]
    outs = pl.pallas_call(
        functools.partial(_ema_k_encoder_kernel, m=m),
        out_shape=(jax.ShapeDtypeStruct((n, DIM), jnp.float32),)
        + tuple(jax.ShapeDtypeStruct(s, jnp.float32) for s in p_shapes),
        grid=(1,),
        in_specs=[_full_spec(patches.shape)] + [_full_spec(s) for s in p_shapes] * 2,
        out_specs=(_full_spec((n, DIM)),) + tuple(_full_spec(s) for s in p_shapes),
    )(patches, *(enc_q[nm] for nm in _PARAM_NAMES),
      *(enc_k[nm] for nm in _PARAM_NAMES))
    return outs[0], dict(zip(_PARAM_NAMES, outs[1:]))


def contrastive_and_extra_ce(q, k, queue_kd, extra_kd, temp):
    n = q.shape[0]
    kk = queue_kd.shape[0]
    tile = min(kk, QUEUE_TILE)
    assert kk % tile == 0
    return pl.pallas_call(
        functools.partial(_logits_ce_kernel, inv_t=1.0 / temp),
        out_shape=(jax.ShapeDtypeStruct((n, 1), jnp.float32),
                   jax.ShapeDtypeStruct((n, kk), jnp.float32),
                   jax.ShapeDtypeStruct((1,), jnp.float32)),
        grid=(kk // tile,),
        in_specs=[pl.BlockSpec((n, DIM), lambda j: (0, 0)),
                  pl.BlockSpec((n, DIM), lambda j: (0, 0)),
                  pl.BlockSpec((tile, DIM), lambda j: (j, 0)),
                  pl.BlockSpec((EXTRA_K, DIM), lambda j: (0, 0))],
        out_specs=(pl.BlockSpec((n, 1), lambda j: (0, 0)),
                   pl.BlockSpec((n, tile), lambda j: (0, j)),
                   pl.BlockSpec(memory_space=pltpu.MemorySpace.SMEM)),
        compiler_params=pltpu.CompilerParams(dimension_semantics=("arbitrary",)),
    )(q, k, queue_kd, extra_kd)


def distill_kl(q, s_anchor, t_q, t_anchor, mask_row, mask_col):
    args = (q, s_anchor, t_q, t_anchor, mask_row, mask_col)
    return pl.pallas_call(
        _distill_kl_kernel,
        out_shape=jax.ShapeDtypeStruct((1,), jnp.float32),
        grid=(1,),
        in_specs=[_full_spec(a.shape) for a in args],
        out_specs=pl.BlockSpec(memory_space=pltpu.MemorySpace.SMEM),
    )(*args)


def extra_enqueue(extra_kd, keys, mask_col, mask_row, extra_ptr):
    ek = extra_kd.shape[0]
    new_extra = pl.pallas_call(
        _extra_enqueue_kernel,
        out_shape=jax.ShapeDtypeStruct(extra_kd.shape, jnp.float32),
        grid=(1,),
        in_specs=[pl.BlockSpec(memory_space=pltpu.MemorySpace.SMEM),
                  _full_spec(mask_col.shape), _full_spec(mask_row.shape),
                  _full_spec(keys.shape), _full_spec(extra_kd.shape)],
        out_specs=_full_spec(extra_kd.shape),
    )(extra_ptr, mask_col, mask_row, keys, extra_kd)
    n_old = jnp.sum(mask_col).astype(jnp.int32)
    new_ptr = jnp.mod(extra_ptr + n_old, ek)              # unchanged when no old rows
    return new_extra, new_ptr


# ---------------------------------------------------------------------------
# MoCoCCL state & forward
# ---------------------------------------------------------------------------
def init_state(key):
    ks = jax.random.split(key, 4)

    def init_encoder(k):
        k1, k2, k3, k4 = jax.random.split(k, 4)
        wconv = jnp.zeros((CP_PAD, HID_PAD), jnp.float32)
        wconv = wconv.at[:CP, :HID].set(
            0.05 * jax.random.normal(k1, (CP, HID), jnp.float32))
        bconv = jnp.zeros((1, HID_PAD), jnp.float32)
        bconv = bconv.at[:, :HID].set(
            0.05 * jax.random.normal(k2, (1, HID), jnp.float32))
        wfc = jnp.zeros((HID_PAD, DIM), jnp.float32)
        wfc = wfc.at[:HID, :].set(
            0.05 * jax.random.normal(k3, (HID, DIM), jnp.float32))
        bfc = 0.05 * jax.random.normal(k4, (1, DIM), jnp.float32)
        return {"wconv": wconv, "bconv": bconv, "wfc": wfc, "bfc": bfc}

    enc_q = init_encoder(ks[0])
    enc_k = dict(enc_q)                         # param_k.copy_(param_q)
    teacher = init_encoder(ks[1])               # independently initialised (__init__)

    def _rows_normalize(x):
        return x * lax.rsqrt(jnp.maximum(jnp.sum(x * x, axis=1, keepdims=True), 1e-24))

    # queues stored row-major as (K, dim) == PyTorch queue.T (lane-dense rows)
    queue = _rows_normalize(jax.random.normal(ks[2], (K, DIM), jnp.float32))
    extra = _rows_normalize(jax.random.normal(ks[3], (EXTRA_K, DIM), jnp.float32))

    return {"enc_q": enc_q, "enc_k": enc_k, "teacher": teacher,
            "queue": queue, "queue_ptr": jnp.array(0, jnp.int32),
            "extra_queue": extra, "extra_ptr": jnp.zeros((1,), jnp.int32),
            "t": 0}


@functools.partial(jax.jit,
                   static_argnames=("incremental", "do_distill"),
                   donate_argnames=("queue",))
def _train_step(enc_q, enc_k, teacher, queue, queue_ptr, extra_queue, extra_ptr,
                im_q, im_k, im_raw, is_from_old, *, incremental, do_distill):
    n = im_q.shape[0]

    # ----- query (+ teacher) branch: shared im2col, one kernel, grid over weight sets
    if do_distill:
        patches, nb, _ = _im2col_padded(jnp.concatenate([im_q, im_raw], axis=0))
        feats = encoder_forward_multi(patches, nb, [enc_q, teacher])     # (2, 2n, DIM)
        q, s_anchor = feats[0, :n], feats[0, n:]
        t_q, t_anchor = feats[1, :n], feats[1, n:]
    else:
        patches, nb, _ = _im2col_padded(im_q)
        q = encoder_forward_multi(patches, nb, [enc_q])[0]

    # ----- momentum update + key branch (fused EMA + forward, one launch)
    # TODO(synk): concat_all_gather / _batch_shuffle_ddp / _batch_unshuffle_ddp are
    # single-device identity ops and therefore skipped.
    k, new_enc_k = ema_and_k_forward(im_k, enc_q, enc_k, M)

    # ----- contrastive logits + extra-sample CE(label=0), queue streamed over a grid
    l_pos, l_neg, ce_extra = contrastive_and_extra_ce(q, k, queue, extra_queue, T)
    logits = jnp.concatenate([l_pos, l_neg], axis=1)           # (n, 1+K), built once
    labels = jnp.zeros((n,), jnp.int32)                        # torch.long -> int32

    incremental_loss = jnp.float32(0.0)
    if incremental:
        incremental_loss = incremental_loss + 0.1 * ce_extra[0]
        mask_col = (is_from_old.reshape(1, -1) == 1).astype(jnp.float32)   # (1, n)
        mask_row = jnp.reshape(mask_col, (-1, 1))                          # (n, 1)
    if do_distill:
        kl = distill_kl(q, s_anchor, t_q, t_anchor, mask_row, mask_col)    # 0 if none old
        incremental_loss = incremental_loss + 0.1 * kl[0]

    # ----- _dequeue_and_enqueue: main queue slab write (in place via donated queue)
    new_queue = lax.dynamic_update_slice_in_dim(queue, k, queue_ptr, axis=0)
    new_qptr = jnp.mod(queue_ptr + n, K).astype(jnp.int32)
    if incremental:
        # no-op when there are no is_from_old rows (matches the idx.sum() > 0 guard)
        new_extra, new_extra_ptr = extra_enqueue(extra_queue, k, mask_col, mask_row,
                                                 extra_ptr)
        # TODO(synk): the bs >= extra_sample_K branch cannot occur at this batch size.
    else:
        new_extra, new_extra_ptr = extra_queue, extra_ptr

    return (new_enc_k, new_queue, new_qptr, new_extra, new_extra_ptr,
            incremental_loss, logits, labels)


@jax.jit
def _feature_step(enc_q, im_q):
    patches, n, _ = _im2col_padded(im_q)
    return encoder_forward_multi(patches, n, [enc_q])[0]


def forward_train(state, im_q, im_k, im_raw, is_from_old, t):
    state = dict(state)

    # ----- task-switch bookkeeping (host ints, mirroring the module's scalar buffers)
    if state["t"] < t:
        if state["t"] == 0:
            state["extra_queue"] = state["queue"][:EXTRA_K]    # begin_incremental
        state["t"] = t
        state["teacher"] = dict(state["enc_q"])                # reset_teacher
        state["enc_k"] = dict(state["enc_q"])                  # reset_k
        # TODO(synk): teacher.eval() is a no-op (synthetic encoder has no BN / dropout)

    t_now = state["t"]
    n = im_q.shape[0]
    assert K % n == 0
    incremental = t_now > 0
    if incremental:
        assert is_from_old is not None, "is_from_old is required when t > 0"
    do_distill = incremental and (im_raw is not None)

    (new_enc_k, new_queue, new_qptr, new_extra, new_extra_ptr,
     inc_loss, logits, labels) = _train_step(
        state["enc_q"], state["enc_k"], state["teacher"],
        state["queue"], state["queue_ptr"], state["extra_queue"], state["extra_ptr"],
        im_q, im_k,
        im_raw if do_distill else None,
        is_from_old if incremental else None,
        incremental=incremental, do_distill=do_distill)

    state["enc_k"] = new_enc_k
    state["queue"] = new_queue
    state["queue_ptr"] = new_qptr
    state["extra_queue"] = new_extra
    state["extra_ptr"] = new_extra_ptr
    return state, (inc_loss, logits, labels)


def moco_ccl_forward(state, im_q, im_k=None, im_raw=None, is_from_old=None,
                     mode="train", t=0):
    assert mode in ["train", "feature"]
    if mode == "feature":
        return _feature_step(state["enc_q"], im_q)
    return forward_train(state, im_q, im_k, im_raw, is_from_old, t)


# ---------------------------------------------------------------------------
if __name__ == "__main__":
    key = jax.random.PRNGKey(0)
    k1, k2, k3, k4 = jax.random.split(key, 4)

    state = init_state(k4)
    im_q = jax.random.normal(k1, (N, C_IN, H, W), jnp.float32)      # NCHW like PyTorch
    im_k = jax.random.normal(k2, (N, C_IN, H, W), jnp.float32)
    im_raw = jax.random.normal(k3, (N, C_IN, H, W), jnp.float32)
    is_from_old = jnp.array([1, 0, 1, 0, 1, 1, 0, 0], dtype=jnp.int32).reshape(N, 1)

    # feature mode (forward_encoder_q path)
    feats = moco_ccl_forward(state, im_q, mode="feature")

    # train mode with incremental step t=1
    new_state, (inc_loss, logits, labels) = moco_ccl_forward(
        state, im_q, im_k, im_raw, is_from_old, mode="train", t=1)

    jax.block_until_ready((feats, inc_loss, logits, labels,
                           new_state["queue"], new_state["queue_ptr"],
                           new_state["extra_queue"], new_state["extra_ptr"]))
    assert feats.shape == (N, DIM)
    assert logits.shape == (N, 1 + K)
    assert labels.shape == (N,)
    print("KERNEL_OK")
</pallas_src>

<mosaic_0001>
module attributes {stable_mosaic.version = 11 : i64} {
  func.func @_encoder_kernel(%arg0: i32, %arg1: memref<2048x128xf32, #tpu.memory_space<vmem>>, %arg2: memref<1x128x128xf32, #tpu.memory_space<vmem>>, %arg3: memref<1x1x128xf32, #tpu.memory_space<vmem>>, %arg4: memref<1x128x128xf32, #tpu.memory_space<vmem>>, %arg5: memref<1x1x128xf32, #tpu.memory_space<vmem>>, %arg6: memref<1x8x128xf32, #tpu.memory_space<vmem>>) attributes {dimension_semantics = [#tpu.dimension_semantics<parallel>], iteration_bounds = array<i64: 1>, scalar_prefetch = 0 : i64, scratch_operands = 0 : i64, tpu.core_type = #tpu.core_type<tc>, window_params = [{pipeline_mode = #tpu.pipeline_mode<synchronous>, transform_indices = @transform_0, window_bounds = array<i64: 2048, 128>}, {transform_indices = @transform_1, window_bounds = array<i64: 1, 128, 128>}, {transform_indices = @transform_2, window_bounds = array<i64: 1, 1, 128>}, {transform_indices = @transform_3, window_bounds = array<i64: 1, 128, 128>}, {transform_indices = @transform_4, window_bounds = array<i64: 1, 1, 128>}, {transform_indices = @transform_5, window_bounds = array<i64: 1, 8, 128>}]} {
    %c0 = arith.constant 0 : index
    %c0_0 = arith.constant 0 : index
    %0 = vector.load %arg1[%c0, %c0_0] : memref<2048x128xf32, #tpu.memory_space<vmem>>, vector<2048x128xf32>
    %c0_1 = arith.constant 0 : index
    %c0_2 = arith.constant 0 : index
    %c0_3 = arith.constant 0 : index
    %1 = vector.load %arg2[%c0_1, %c0_2, %c0_3] : memref<1x128x128xf32, #tpu.memory_space<vmem>>, vector<1x128x128xf32>
    %2 = vector.shape_cast %1 : vector<1x128x128xf32> to vector<128x128xf32>
    %cst = arith.constant dense<0.000000e+00> : vector<2048x128xf32>
    %3 = tpu.matmul %0, %2, %cst {dimension_numbers = #tpu.dot_dimension_numbers<[1], [0], [0], [1], [0, 0, 1, 1], [], []>} : vector<2048x128xf32>, vector<128x128xf32>, vector<2048x128xf32> -> vector<2048x128xf32>
    %c0_4 = arith.constant 0 : index
    %c0_5 = arith.constant 0 : index
    %c0_6 = arith.constant 0 : index
    %4 = vector.load %arg3[%c0_4, %c0_5, %c0_6] : memref<1x1x128xf32, #tpu.memory_space<vmem>>, vector<1x1x128xf32>
    %5 = vector.shape_cast %4 : vector<1x1x128xf32> to vector<1x128xf32>
    %6 = vector.broadcast %5 : vector<1x128xf32> to vector<2048x128xf32>
    %7 = arith.addf %3, %6 : vector<2048x128xf32>
    %cst_7 = arith.constant 0.000000e+00 : f32
    %8 = vector.broadcast %cst_7 : f32 to vector<2048x128xf32>
    %9 = arith.maximumf %7, %8 : vector<2048x128xf32>
    %10 = vector.shape_cast %9 : vector<2048x128xf32> to vector<8x256x128xf32>
    %cst_8 = arith.constant dense<0.000000e+00> : vector<8x128xf32>
    %11 = vector.multi_reduction <add>, %10, %cst_8 [1] : vector<8x256x128xf32> to vector<8x128xf32>
    %cst_9 = arith.constant 2.560000e+02 : f32
    %12 = vector.broadcast %cst_9 : f32 to vector<8x128xf32>
    %13 = arith.divf %11, %12 : vector<8x128xf32>
    %c0_10 = arith.constant 0 : index
    %c0_11 = arith.constant 0 : index
    %c0_12 = arith.constant 0 : index
    %14 = vector.load %arg4[%c0_10, %c0_11, %c0_12] : memref<1x128x128xf32, #tpu.memory_space<vmem>>, vector<1x128x128xf32>
    %15 = vector.shape_cast %14 : vector<1x128x128xf32> to vector<128x128xf32>
    %cst_13 = arith.constant dense<0.000000e+00> : vector<8x128xf32>
    %16 = tpu.matmul %13, %15, %cst_13 {dimension_numbers = #tpu.dot_dimension_numbers<[1], [0], [0], [1], [0, 0, 1, 1], [], []>} : vector<8x128xf32>, vector<128x128xf32>, vector<8x128xf32> -> vector<8x128xf32>
    %c0_14 = arith.constant 0 : index
    %c0_15 = arith.constant 0 : index
    %c0_16 = arith.constant 0 : index
    %17 = vector.load %arg5[%c0_14, %c0_15, %c0_16] : memref<1x1x128xf32, #tpu.memory_space<vmem>>, vector<1x1x128xf32>
    %18 = vector.shape_cast %17 : vector<1x1x128xf32> to vector<1x128xf32>
    %19 = vector.broadcast %18 : vector<1x128xf32> to vector<8x128xf32>
    %20 = arith.addf %16, %19 : vector<8x128xf32>
    %21 = arith.mulf %20, %20 : vector<8x128xf32>
    %cst_17 = arith.constant dense<0.000000e+00> : vector<8xf32>
    %22 = vector.multi_reduction <add>, %21, %cst_17 [1] : vector<8x128xf32> to vector<8xf32>
    %23 = vector.shape_cast %22 : vector<8xf32> to vector<8x1xf32>
    %cst_18 = arith.constant 1.000000e-24 : f32
    %24 = vector.broadcast %cst_18 : f32 to vector<8x1xf32>
    %25 = arith.maximumf %23, %24 : vector<8x1xf32>
    %26 = math.rsqrt %25 : vector<8x1xf32>
    %27 = vector.broadcast %26 : vector<8x1xf32> to vector<8x128xf32>
    %28 = arith.mulf %20, %27 : vector<8x128xf32>
    %c0_19 = arith.constant 0 : index
    %c0_20 = arith.constant 0 : index
    %c0_21 = arith.constant 0 : index
    %29 = vector.load %arg6[%c0_19, %c0_20, %c0_21] : memref<1x8x128xf32, #tpu.memory_space<vmem>>, vector<1x8x128xf32>
    %30 = vector.shape_cast %29 : vector<1x8x128xf32> to vector<8x128xf32>
    %31 = vector.shape_cast %28 : vector<8x128xf32> to vector<1x8x128xf32>
    tpu.vector_store %arg6[%c0_19, %c0_20, %c0_21], %31 {strides = array<i32>} : memref<1x8x128xf32, #tpu.memory_space<vmem>>, vector<1x8x128xf32>,
    return
  }
  func.func @transform_0(%arg0: i32) -> (i32, i32) {
    %c0_i32 = arith.constant 0 : i32
    %c0_i32_0 = arith.constant 0 : i32
    %c0_i32_1 = arith.constant 0 : i32
    return %c0_i32, %c0_i32_0 : i32, i32
  }
  func.func @transform_1(%arg0: i32) -> (i32, i32, i32) {
    %c0_i32 = arith.constant 0 : i32
    %c0_i32_0 = arith.constant 0 : i32
    %c0_i32_1 = arith.constant 0 : i32
    return %arg0, %c0_i32, %c0_i32_0 : i32, i32, i32
  }
  func.func @transform_2(%arg0: i32) -> (i32, i32, i32) {
    %c0_i32 = arith.constant 0 : i32
    %c0_i32_0 = arith.constant 0 : i32
    %c0_i32_1 = arith.constant 0 : i32
    return %arg0, %c0_i32, %c0_i32_0 : i32, i32, i32
  }
  func.func @transform_3(%arg0: i32) -> (i32, i32, i32) {
    %c0_i32 = arith.constant 0 : i32
    %c0_i32_0 = arith.constant 0 : i32
    %c0_i32_1 = arith.constant 0 : i32
    return %arg0, %c0_i32, %c0_i32_0 : i32, i32, i32
  }
  func.func @transform_4(%arg0: i32) -> (i32, i32, i32) {
    %c0_i32 = arith.constant 0 : i32
    %c0_i32_0 = arith.constant 0 : i32
    %c0_i32_1 = arith.constant 0 : i32
    return %arg0, %c0_i32, %c0_i32_0 : i32, i32, i32
  }
  func.func @transform_5(%arg0: i32) -> (i32, i32, i32) {
    %c0_i32 = arith.constant 0 : i32
    %c0_i32_0 = arith.constant 0 : i32
    %c0_i32_1 = arith.constant 0 : i32
    return %arg0, %c0_i32, %c0_i32_0 : i32, i32, i32
  }
}

</mosaic_0001>

<bundles_post_ra>
// kernel: _feature_step.1
= control target key start
LH: loop header
LB: loop body
LE: loop exit
PB: predicated region body
PF: predicated region fallthrough
CT: control target
= control target key end

     0   :  { %s3377_s0 = inlined_call_operand.vmem [shape: f32[2048,128], index: 0, kind: input, shape index: {}]   ;;  %s3378_s1 = inlined_call_operand.vmem [shape: f32[1,128,128], index: 1, kind: input, shape index: {}]   ;;  %s3379_s2 = inlined_call_operand.vmem [shape: f32[1,1,128], index: 2, kind: input, shape index: {}]   ;;  %s3380_s3 = inlined_call_operand.vmem [shape: f32[1,128,128], index: 3, kind: input, shape index: {}]   ;;  %s3381_s4 = inlined_call_operand.vmem [shape: f32[1,1,128], index: 4, kind: input, shape index: {}]   ;;  %s3382_s5 = inlined_call_operand.hbm [shape: f32[1,8,128], index: 5, kind: output, shape index: {}]  }
   0x1   :  { %v292_v0 = vld [vmem:[%s3378_s1 + $0x78] sm:$0xff]  ;;  %v291_v1 = vld [vmem:[%s3378_s1 + $0x70] sm:$0xff]  ;;  %v290_v2 = vld [vmem:[%s3378_s1 + $0x68] sm:$0xff] }
   0x2   :  { %297 = vmatpush.msra.mxu0 %v292_v0  ;;  %1744 = vmatpush.msra.mxu1 %v292_v0  ;;  %v289_v3 = vld [vmem:[%s3378_s1 + $0x60] sm:$0xff]  ;;  %v288_v4 = vld [vmem:[%s3378_s1 + $0x58] sm:$0xff] }
   0x3   :  { %1745 = vmatpush.msra.mxu2 %v292_v0  ;;  %1746 = vmatpush.msra.mxu3 %v292_v0 }
   0x4   :  { %298 = vmatpush.msra.mxu0 %v291_v1  ;;  %1747 = vmatpush.msra.mxu1 %v291_v1 }
   0x5   :  { %1748 = vmatpush.msra.mxu2 %v291_v1  ;;  %1749 = vmatpush.msra.mxu3 %v291_v1 }
   0x6   :  { %299 = vmatpush.msra.mxu0 %v290_v2  ;;  %1750 = vmatpush.msra.mxu1 %v290_v2 }
   0x7   :  { %1751 = vmatpush.msra.mxu2 %v290_v2  ;;  %1752 = vmatpush.msra.mxu3 %v290_v2 }
   0x8   :  { %300 = vmatpush.msra.mxu0 %v289_v3  ;;  %1753 = vmatpush.msra.mxu1 %v289_v3 }
   0x9   :  { %10 = vsyncpa [#allocation3], 0  ;;  %1754 = vmatpush.msra.mxu2 %v289_v3  ;;  %1755 = vmatpush.msra.mxu3 %v289_v3  ;;  %v287_v5 = vld [vmem:[%s3378_s1 + $0x50] sm:$0xff]  ;;  %v286_v6 = vld [vmem:[%s3378_s1 + $0x48] sm:$0xff]  ;;  %vm1677_vm1 = vcmask 1041409   ;;  %vm1679_vm2 = vcmask 1042434  }
   0xa   :  { %301 = vmatpush.msra.mxu0 %v288_v4  ;;  %1756 = vmatpush.msra.mxu1 %v288_v4  ;;  %v285_v7 = vld [vmem:[%s3378_s1 + $0x40] sm:$0xff]  ;;  %v284_v8 = vld [vmem:[%s3378_s1 + $0x38] sm:$0xff]  ;;  %v283_v9 = vld [vmem:[%s3378_s1 + $0x30] sm:$0xff]  ;;  %vm1681_vm3 = vcmask 1043459   ;;  %vm1683_vm4 = vcmask 1044484   ;;  %vm1685_vm5 = vcmask 1045509  }
   0xb   :  { %1757 = vmatpush.msra.mxu2 %v288_v4  ;;  %1758 = vmatpush.msra.mxu3 %v288_v4  ;;  %v282_v10 = vld [vmem:[%s3378_s1 + $0x28] sm:$0xff]  ;;  %v281_v11 = vld [vmem:[%s3378_s1 + $0x20] sm:$0xff]  ;;  %v280_v12 = vld [vmem:[%s3378_s1 + $0x18] sm:$0xff]  ;;  %vm1687_vm6 = vcmask 1046534   ;;  %vm1689_vm7 = vcmask 1047559   ;;  %s1829_s28 = smov [#allocation2]  }
   0xc   :  { %302 = vmatpush.msra.mxu0 %v287_v5  ;;  %1759 = vmatpush.msra.mxu1 %v287_v5  ;;  %v279_v13 = vld [vmem:[%s3378_s1 + $0x10] sm:$0xff]  ;;  %v278_v14 = vld [vmem:[%s3378_s1 + $0x8] sm:$0xff]  ;;  %v277_v15 = vld [vmem:[%s3378_s1] sm:$0xff]  ;;  %s1733_s29 = sshll.u32 %s1829_s28, 4  ;;  %s1734_s29 = int_to_ptr.vmem [resolvable:$true] %s1733_s29 }
   0xd   :  { %1760 = vmatpush.msra.mxu2 %v287_v5  ;;  %1761 = vmatpush.msra.mxu3 %v287_v5  ;;  %v21_v16 = vld [vmem:[%s3377_s0] sm:$0xff]  ;;  %v147_v18 = vld [vmem:[%s3377_s0 + $0x3f0] sm:$0xff]  ;;  %v212_v19 = vld [vmem:[%s3377_s0 + $0x5f8] sm:$0xff] }
   0xe   :  { %303 = vmatpush.msra.mxu0 %v286_v6  ;;  %1762 = vmatpush.msra.mxu1 %v286_v6  ;;  %v85_v17 = vld [vmem:[%s3377_s0 + $0x200] sm:$0xff]  ;;  %v22_v20 = vld [vmem:[%s3377_s0 + $0x8] sm:$0xff]  ;;  %v148_v22 = vld [vmem:[%s3377_s0 + $0x3f8] sm:$0xff] }
   0xf   :  { %1763 = vmatpush.msra.mxu2 %v286_v6  ;;  %1764 = vmatpush.msra.mxu3 %v286_v6  ;;  %v86_v21 = vld [vmem:[%s3377_s0 + $0x208] sm:$0xff]  ;;  %v213_v23 = vld [vmem:[%s3377_s0 + $0x600] sm:$0xff]  ;;  %v23_v24 = vld [vmem:[%s3377_s0 + $0x10] sm:$0xff] }
  0x10   :  { %304 = vmatpush.msra.mxu0 %v285_v7  ;;  %1765 = vmatpush.msra.mxu1 %v285_v7  ;;  %v87_v25 = vld [vmem:[%s3377_s0 + $0x210] sm:$0xff]  ;;  %v149_v26 = vld [vmem:[%s3377_s0 + $0x400] sm:$0xff]  ;;  %v214_v27 = vld [vmem:[%s3377_s0 + $0x608] sm:$0xff] }
  0x11   :  { %1766 = vmatpush.msra.mxu2 %v285_v7  ;;  %1767 = vmatpush.msra.mxu3 %v285_v7  ;;  %v24_v28 = vld [vmem:[%s3377_s0 + $0x18] sm:$0xff]  ;;  %v150_v30 = vld [vmem:[%s3377_s0 + $0x408] sm:$0xff]  ;;  %v215_v31 = vld [vmem:[%s3377_s0 + $0x610] sm:$0xff] }
  0x12   :  { %305 = vmatpush.msra.mxu0 %v284_v8  ;;  %1768 = vmatpush.msra.mxu1 %v284_v8  ;;  %v88_v29 = vld [vmem:[%s3377_s0 + $0x218] sm:$0xff]  ;;  %v25_v32 = vld [vmem:[%s3377_s0 + $0x20] sm:$0xff]  ;;  %v151_v34 = vld [vmem:[%s3377_s0 + $0x410] sm:$0xff] }
  0x13   :  { %1769 = vmatpush.msra.mxu2 %v284_v8  ;;  %1770 = vmatpush.msra.mxu3 %v284_v8  ;;  %v89_v33 = vld [vmem:[%s3377_s0 + $0x220] sm:$0xff]  ;;  %v216_v35 = vld [vmem:[%s3377_s0 + $0x618] sm:$0xff]  ;;  %v26_v36 = vld [vmem:[%s3377_s0 + $0x28] sm:$0xff] }
  0x14   :  { %306 = vmatpush.msra.mxu0 %v283_v9  ;;  %1771 = vmatpush.msra.mxu1 %v283_v9  ;;  %v90_v37 = vld [vmem:[%s3377_s0 + $0x228] sm:$0xff]  ;;  %v152_v38 = vld [vmem:[%s3377_s0 + $0x418] sm:$0xff]  ;;  %v217_v39 = vld [vmem:[%s3377_s0 + $0x620] sm:$0xff] }
  0x15   :  { %1772 = vmatpush.msra.mxu2 %v283_v9  ;;  %1773 = vmatpush.msra.mxu3 %v283_v9  ;;  %v27_v40 = vld [vmem:[%s3377_s0 + $0x30] sm:$0xff]  ;;  %v153_v42 = vld [vmem:[%s3377_s0 + $0x420] sm:$0xff]  ;;  %v218_v43 = vld [vmem:[%s3377_s0 + $0x628] sm:$0xff] }
  0x16   :  { %307 = vmatpush.msra.mxu0 %v282_v10  ;;  %1774 = vmatpush.msra.mxu1 %v282_v10  ;;  %v91_v41 = vld [vmem:[%s3377_s0 + $0x230] sm:$0xff]  ;;  %v28_v44 = vld [vmem:[%s3377_s0 + $0x38] sm:$0xff]  ;;  %v154_v46 = vld [vmem:[%s3377_s0 + $0x428] sm:$0xff] }
  0x17   :  { %1775 = vmatpush.msra.mxu2 %v282_v10  ;;  %1776 = vmatpush.msra.mxu3 %v282_v10  ;;  %v92_v45 = vld [vmem:[%s3377_s0 + $0x238] sm:$0xff]  ;;  %v219_v47 = vld [vmem:[%s3377_s0 + $0x630] sm:$0xff]  ;;  %v29_v48 = vld [vmem:[%s3377_s0 + $0x40] sm:$0xff] }
  0x18   :  { %308 = vmatpush.msra.mxu0 %v281_v11  ;;  %1777 = vmatpush.msra.mxu1 %v281_v11  ;;  %v93_v49 = vld [vmem:[%s3377_s0 + $0x240] sm:$0xff]  ;;  %v155_v50 = vld [vmem:[%s3377_s0 + $0x430] sm:$0xff]  ;;  %v220_v51 = vld [vmem:[%s3377_s0 + $0x638] sm:$0xff] }
  0x19   :  { %1778 = vmatpush.msra.mxu2 %v281_v11  ;;  %1779 = vmatpush.msra.mxu3 %v281_v11  ;;  %v30_v52 = vld [vmem:[%s3377_s0 + $0x48] sm:$0xff]  ;;  %v156_v54 = vld [vmem:[%s3377_s0 + $0x438] sm:$0xff]  ;;  %v221_v55 = vld [vmem:[%s3377_s0 + $0x640] sm:$0xff] }
  0x1a   :  { %309 = vmatpush.msra.mxu0 %v280_v12  ;;  %1780 = vmatpush.msra.mxu1 %v280_v12  ;;  %v94_v53 = vld [vmem:[%s3377_s0 + $0x248] sm:$0xff]  ;;  %v31_v56 = vld [vmem:[%s3377_s0 + $0x50] sm:$0xff]  ;;  %v157_v58 = vld [vmem:[%s3377_s0 + $0x440] sm:$0xff] }
  0x1b   :  { %1781 = vmatpush.msra.mxu2 %v280_v12  ;;  %1782 = vmatpush.msra.mxu3 %v280_v12  ;;  %v95_v57 = vld [vmem:[%s3377_s0 + $0x250] sm:$0xff]  ;;  %v222_v59 = vld [vmem:[%s3377_s0 + $0x648] sm:$0xff]  ;;  %v32_v60 = vld [vmem:[%s3377_s0 + $0x58] sm:$0xff] }
  0x1c   :  { %310 = vmatpush.msra.mxu0 %v279_v13  ;;  %1783 = vmatpush.msra.mxu1 %v279_v13  ;;  %v96_v61 = vld [vmem:[%s3377_s0 + $0x258] sm:$0xff]  ;;  %v158_v62 = vld [vmem:[%s3377_s0 + $0x448] sm:$0xff]  ;;  %v223_v63 = vld [vmem:[%s3377_s0 + $0x650] sm:$0xff] }
  0x1d   :  { %1784 = vmatpush.msra.mxu2 %v279_v13  ;;  %1785 = vmatpush.msra.mxu3 %v279_v13  ;;  %v33_v0 = vld [vmem:[%s3377_s0 + $0x60] sm:$0xff]  ;;  %v159_v2 = vld [vmem:[%s3377_s0 + $0x450] sm:$0xff]  ;;  %v224_v3 = vld [vmem:[%s3377_s0 + $0x658] sm:$0xff] }
  0x1e   :  { %311 = vmatpush.msra.mxu0 %v278_v14  ;;  %1786 = vmatpush.msra.mxu1 %v278_v14  ;;  %v97_v1 = vld [vmem:[%s3377_s0 + $0x260] sm:$0xff]  ;;  %v34_v4 = vld [vmem:[%s3377_s0 + $0x68] sm:$0xff]  ;;  %v160_v6 = vld [vmem:[%s3377_s0 + $0x458] sm:$0xff] }
  0x1f   :  { %1787 = vmatpush.msra.mxu2 %v278_v14  ;;  %1788 = vmatpush.msra.mxu3 %v278_v14  ;;  %v98_v5 = vld [vmem:[%s3377_s0 + $0x268] sm:$0xff]  ;;  %v225_v7 = vld [vmem:[%s3377_s0 + $0x660] sm:$0xff]  ;;  %v35_v8 = vld [vmem:[%s3377_s0 + $0x70] sm:$0xff] }
  0x20   :  { %312 = vmatpush.msra.mxu0 %v277_v15  ;;  %1789 = vmatpush.msra.mxu1 %v277_v15  ;;  %v99_v9 = vld [vmem:[%s3377_s0 + $0x270] sm:$0xff]  ;;  %v161_v10 = vld [vmem:[%s3377_s0 + $0x460] sm:$0xff]  ;;  %v226_v11 = vld [vmem:[%s3377_s0 + $0x668] sm:$0xff] }
  0x21   :  { %1790 = vmatpush.msra.mxu2 %v277_v15  ;;  %1791 = vmatpush.msra.mxu3 %v277_v15  ;;  %v36_v12 = vld [vmem:[%s3377_s0 + $0x78] sm:$0xff]  ;;  %v162_v14 = vld [vmem:[%s3377_s0 + $0x468] sm:$0xff]  ;;  %v227_v15 = vld [vmem:[%s3377_s0 + $0x670] sm:$0xff] }
  0x22   :  { %313 = vmatmul.f32.vlgmr.msra.gmra.mxu0 %v21_v16  ;;  %505 = vmatmul.f32.vlgmr.msra.gmra.mxu1 %v85_v17  ;;  %v100_v13 = vld [vmem:[%s3377_s0 + $0x278] sm:$0xff] }
  0x23   :  { %691 = vmatmul.f32.vlgmr.msra.gmra.mxu2 %v147_v18  ;;  %886 = vmatmul.f32.vlgmr.msra.gmra.mxu3 %v212_v19  ;;  %v37_v18 = vld [vmem:[%s3377_s0 + $0x80] sm:$0xff] }
  0x24   :  { %v101_v19 = vld [vmem:[%s3377_s0 + $0x280] sm:$0xff] }
  0x2a   :  { %316 = vmatmul.f32.gmra.mxu0 %v22_v20  ;;  %508 = vmatmul.f32.gmra.mxu1 %v86_v21  ;;  %v163_v20 = vld [vmem:[%s3377_s0 + $0x470] sm:$0xff]  ;;  %v228_v21 = vld [vmem:[%s3377_s0 + $0x678] sm:$0xff] }
  0x2b   :  { %694 = vmatmul.f32.gmra.mxu2 %v148_v22  ;;  %889 = vmatmul.f32.gmra.mxu3 %v213_v23 }
  0x32   :  { %319 = vmatmul.f32.gmra.mxu0 %v23_v24  ;;  %511 = vmatmul.f32.gmra.mxu1 %v87_v25 }
  0x33   :  { %697 = vmatmul.f32.gmra.mxu2 %v149_v26  ;;  %892 = vmatmul.f32.gmra.mxu3 %v214_v27  ;;  %v38_v26 = vld [vmem:[%s3377_s0 + $0x88] sm:$0xff] }
  0x34   :  { %v102_v27 = vld [vmem:[%s3377_s0 + $0x288] sm:$0xff] }
  0x3a   :  { %322 = vmatmul.f32.gmra.mxu0 %v24_v28  ;;  %514 = vmatmul.f32.gmra.mxu1 %v88_v29  ;;  %v164_v28 = vld [vmem:[%s3377_s0 + $0x478] sm:$0xff]  ;;  %v229_v29 = vld [vmem:[%s3377_s0 + $0x680] sm:$0xff] }
  0x3b   :  { %700 = vmatmul.f32.gmra.mxu2 %v150_v30  ;;  %895 = vmatmul.f32.gmra.mxu3 %v215_v31 }
  0x42   :  { %325 = vmatmul.f32.gmra.mxu0 %v25_v32  ;;  %517 = vmatmul.f32.gmra.mxu1 %v89_v33 }
  0x43   :  { %703 = vmatmul.f32.gmra.mxu2 %v151_v34  ;;  %898 = vmatmul.f32.gmra.mxu3 %v216_v35  ;;  %v39_v34 = vld [vmem:[%s3377_s0 + $0x90] sm:$0xff] }
  0x44   :  { %v103_v35 = vld [vmem:[%s3377_s0 + $0x290] sm:$0xff] }
  0x4a   :  { %328 = vmatmul.f32.gmra.mxu0 %v26_v36  ;;  %520 = vmatmul.f32.gmra.mxu1 %v90_v37  ;;  %v165_v36 = vld [vmem:[%s3377_s0 + $0x480] sm:$0xff]  ;;  %v230_v37 = vld [vmem:[%s3377_s0 + $0x688] sm:$0xff] }
  0x4b   :  { %706 = vmatmul.f32.gmra.mxu2 %v152_v38  ;;  %901 = vmatmul.f32.gmra.mxu3 %v217_v39  ;;  %v2157_v38 = vld [vmem:[%s3379_s2] ss:$0 sm:$0xff]  ;;  %v1664_v39 = vld [vmem:[%s3380_s3 + $0x78] sm:$0xff] }
  0x4c   :  { %1692 = vmatpush.msrb.mxu1 %v1664_v39 }
  0x52   :  { %331 = vmatmul.f32.gmra.mxu0 %v27_v40  ;;  %523 = vmatmul.f32.gmra.mxu1 %v91_v41 }
  0x53   :  { %709 = vmatmul.f32.gmra.mxu2 %v153_v42  ;;  %904 = vmatmul.f32.gmra.mxu3 %v218_v43 }
  0x5a   :  { %334 = vmatmul.f32.gmra.mxu0 %v28_v44  ;;  %526 = vmatmul.f32.gmra.mxu1 %v92_v45 }
  0x5b   :  { %712 = vmatmul.f32.gmra.mxu2 %v154_v46  ;;  %907 = vmatmul.f32.gmra.mxu3 %v219_v47  ;;  %v40_v46 = vld [vmem:[%s3377_s0 + $0x98] sm:$0xff] }
  0x5c   :  { %v104_v47 = vld [vmem:[%s3377_s0 + $0x298] sm:$0xff] }
  0x62   :  { %337 = vmatmul.f32.gmra.mxu0 %v29_v48  ;;  %529 = vmatmul.f32.gmra.mxu1 %v93_v49  ;;  %v166_v48 = vld [vmem:[%s3377_s0 + $0x488] sm:$0xff]  ;;  %v231_v49 = vld [vmem:[%s3377_s0 + $0x690] sm:$0xff] }
  0x63   :  { %715 = vmatmul.f32.gmra.mxu2 %v155_v50  ;;  %910 = vmatmul.f32.gmra.mxu3 %v220_v51 }
  0x6a   :  { %340 = vmatmul.f32.gmra.mxu0 %v30_v52  ;;  %532 = vmatmul.f32.gmra.mxu1 %v94_v53 }
  0x6b   :  { %718 = vmatmul.f32.gmra.mxu2 %v156_v54  ;;  %913 = vmatmul.f32.gmra.mxu3 %v221_v55 }
  0x72   :  { %343 = vmatmul.f32.gmra.mxu0 %v31_v56  ;;  %535 = vmatmul.f32.gmra.mxu1 %v95_v57 }
  0x73   :  { %721 = vmatmul.f32.gmra.mxu2 %v157_v58  ;;  %916 = vmatmul.f32.gmra.mxu3 %v222_v59 }
  0x7a   :  { %346 = vmatmul.f32.gmra.mxu0 %v32_v60  ;;  %538 = vmatmul.f32.gmra.mxu1 %v96_v61  ;;  %v41_v60 = vld [vmem:[%s3377_s0 + $0xa0] sm:$0xff] }
  0x7b   :  { %724 = vmatmul.f32.gmra.mxu2 %v158_v62  ;;  %919 = vmatmul.f32.gmra.mxu3 %v223_v63  ;;  %v105_v61 = vld [vmem:[%s3377_s0 + $0x2a0] sm:$0xff]  ;;  %v167_v62 = vld [vmem:[%s3377_s0 + $0x490] sm:$0xff]  ;;  %v232_v63 = vld [vmem:[%s3377_s0 + $0x698] sm:$0xff] }
  0x82   :  { %349 = vmatmul.f32.gmra.mxu0 %v33_v0  ;;  %541 = vmatmul.f32.gmra.mxu1 %v97_v1 }
  0x83   :  { %727 = vmatmul.f32.gmra.mxu2 %v159_v2  ;;  %922 = vmatmul.f32.gmra.mxu3 %v224_v3 }
  0x8a   :  { %352 = vmatmul.f32.gmra.mxu0 %v34_v4  ;;  %544 = vmatmul.f32.gmra.mxu1 %v98_v5 }
  0x8b   :  { %730 = vmatmul.f32.gmra.mxu2 %v160_v6  ;;  %925 = vmatmul.f32.gmra.mxu3 %v225_v7 }
  0x92   :  { %355 = vmatmul.f32.gmra.mxu0 %v35_v8  ;;  %547 = vmatmul.f32.gmra.mxu1 %v99_v9 }
  0x93   :  { %733 = vmatmul.f32.gmra.mxu2 %v161_v10  ;;  %928 = vmatmul.f32.gmra.mxu3 %v226_v11  ;;  %v42_v11 = vld [vmem:[%s3377_s0 + $0xa8] sm:$0xff] }
  0x9a   :  { %358 = vmatmul.f32.gmra.mxu0 %v36_v12  ;;  %550 = vmatmul.f32.gmra.mxu1 %v100_v13  ;;  %v106_v12 = vld [vmem:[%s3377_s0 + $0x2a8] sm:$0xff]  ;;  %v168_v13 = vld [vmem:[%s3377_s0 + $0x498] sm:$0xff] }
  0x9b   :  { %736 = vmatmul.f32.gmra.mxu2 %v162_v14  ;;  %931 = vmatmul.f32.gmra.mxu3 %v227_v15  ;;  %v233_v14 = vld [vmem:[%s3377_s0 + $0x6a0] sm:$0xff] }
  0x9f   :  { %v2100_v16 = vpop.f32.mrf.mxu0  ;;  %v2102_v17 = vpop.f32.mrf.mxu1 }
  0xa2   :  { %361 = vmatmul.f32.gmra.mxu0 %v37_v18  ;;  %553 = vmatmul.f32.gmra.mxu1 %v101_v19 }
  0xa3   :  { %739 = vmatmul.f32.gmra.mxu2 %v163_v20  ;;  %934 = vmatmul.f32.gmra.mxu3 %v228_v21 }
  0xa6   :  { %v2116_v22 = vpop.f32.mrf.mxu2  ;;  %v2118_v23 = vpop.f32.mrf.mxu3 }
  0xa7   :  { %3385 = vst [vmem:[#allocation5_spill] sm:$0xff] %v2116_v22  ;;  %v2120_v24 = vpop.f32.mrf.mxu0  ;;  %v2122_v25 = vpop.f32.mrf.mxu1 }
  0xa8   :  { %3386 = vst [vmem:[#allocation6_spill] sm:$0xff] %v2118_v23 }
  0xaa   :  { %364 = vmatmul.f32.gmra.mxu0 %v38_v26  ;;  %556 = vmatmul.f32.gmra.mxu1 %v102_v27 }
  0xab   :  { %742 = vmatmul.f32.gmra.mxu2 %v164_v28  ;;  %937 = vmatmul.f32.gmra.mxu3 %v229_v29 }
  0xae   :  { %v2136_v30 = vpop.f32.mrf.mxu2  ;;  %v890_v31 = vpop.f32.mrf.mxu3 }
  0xaf   :  { %3387 = vst [vmem:[#allocation7_spill] sm:$0xff] %v2136_v30  ;;  %v2138_v32 = vpop.f32.mrf.mxu0  ;;  %v2140_v33 = vpop.f32.mrf.mxu1  ;;  %v891_v40 = vadd.f32 %v2157_v38, %v890_v31 }
  0xb1   :  { %v1274_v50 = vmax.f32 %v891_v40, 0.0 }
  0xb2   :  { %367 = vmatmul.f32.gmra.mxu0 %v39_v34  ;;  %559 = vmatmul.f32.gmra.mxu1 %v103_v35  ;;  %v43_v34 = vld [vmem:[%s3377_s0 + $0xb0] sm:$0xff] }
  0xb3   :  { %745 = vmatmul.f32.gmra.mxu2 %v165_v36  ;;  %940 = vmatmul.f32.gmra.mxu3 %v230_v37  ;;  %v107_v35 = vld [vmem:[%s3377_s0 + $0x2b0] sm:$0xff]  ;;  %v169_v36 = vld [vmem:[%s3377_s0 + $0x4a0] sm:$0xff]  ;;  %v234_v37 = vld [vmem:[%s3377_s0 + $0x6a8] sm:$0xff] }
  0xb6   :  { %v698_v41 = vpop.f32.mrf.mxu2  ;;  %v893_v42 = vpop.f32.mrf.mxu3 }
  0xb7   :  { %v894_v43 = vadd.f32 %v2157_v38, %v893_v42  ;;  %v2164_v44 = vpop.f32.mrf.mxu0  ;;  %v2166_v45 = vpop.f32.mrf.mxu1  ;;  %v699_v53 = vadd.f32 %v2157_v38, %v698_v41 }
  0xb9   :  { %v1275_v51 = vmax.f32 %v894_v43, 0.0  ;;  %v1210_v0 = vmax.f32 %v699_v53, 0.0  ;;  %v1663_v43 = vld [vmem:[%s3380_s3 + $0x70] sm:$0xff]  ;;  %v108_v53 = vld [vmem:[%s3377_s0 + $0x2b8] sm:$0xff] }
  0xba   :  { %370 = vmatmul.f32.gmra.mxu0 %v40_v46  ;;  %562 = vmatmul.f32.gmra.mxu1 %v104_v47 }
  0xbb   :  { %v1560_v52 = vadd.f32 %v1275_v51, %v1274_v50  ;;  %748 = vmatmul.f32.gmra.mxu2 %v166_v48  ;;  %943 = vmatmul.f32.gmra.mxu3 %v231_v49 }
  0xbc   :  { %1693 = vmatpush.msrb.mxu1 %v1663_v43 }
  0xbe   :  { %v701_v54 = vpop.f32.mrf.mxu2  ;;  %v896_v55 = vpop.f32.mrf.mxu3 }
  0xbf   :  { %v702_v56 = vadd.f32 %v2157_v38, %v701_v54  ;;  %v897_v57 = vadd.f32 %v2157_v38, %v896_v55  ;;  %v2183_v58 = vpop.f32.mrf.mxu0  ;;  %v2185_v59 = vpop.f32.mrf.mxu1  ;;  %v170_v54 = vld [vmem:[%s3377_s0 + $0x4a8] sm:$0xff]  ;;  %v235_v55 = vld [vmem:[%s3377_s0 + $0x6b0] sm:$0xff] }
  0xc1   :  { %v1211_v1 = vmax.f32 %v702_v56, 0.0  ;;  %v1276_v2 = vmax.f32 %v897_v57, 0.0 }
  0xc2   :  { %373 = vmatmul.f32.gmra.mxu0 %v41_v60  ;;  %565 = vmatmul.f32.gmra.mxu1 %v105_v61 }
  0xc3   :  { %v1486_v3 = vadd.f32 %v1211_v1, %v1210_v0  ;;  %v1561_v4 = vadd.f32 %v1560_v52, %v1276_v2  ;;  %751 = vmatmul.f32.gmra.mxu2 %v167_v62  ;;  %946 = vmatmul.f32.gmra.mxu3 %v232_v63  ;;  %v44_v52 = vld [vmem:[%s3377_s0 + $0xb8] sm:$0xff] }
  0xc6   :  { %v704_v5 = vpop.f32.mrf.mxu2  ;;  %v899_v6 = vpop.f32.mrf.mxu3 }
  0xc7   :  { %v705_v7 = vadd.f32 %v2157_v38, %v704_v5  ;;  %v900_v8 = vadd.f32 %v2157_v38, %v899_v6  ;;  %v2201_v9 = vpop.f32.mrf.mxu0  ;;  %v2203_v10 = vpop.f32.mrf.mxu1  ;;  %v109_v5 = vld [vmem:[%s3377_s0 + $0x2c0] sm:$0xff]  ;;  %v171_v6 = vld [vmem:[%s3377_s0 + $0x4b0] sm:$0xff] }
  0xc9   :  { %v1212_v15 = vmax.f32 %v705_v7, 0.0  ;;  %v1277_v18 = vmax.f32 %v900_v8, 0.0  ;;  %v236_v7 = vld [vmem:[%s3377_s0 + $0x6b8] sm:$0xff] }
  0xca   :  { %376 = vmatmul.f32.gmra.mxu0 %v42_v11  ;;  %568 = vmatmul.f32.gmra.mxu1 %v106_v12 }
  0xcb   :  { %v1487_v19 = vadd.f32 %v1486_v3, %v1212_v15  ;;  %v1562_v20 = vadd.f32 %v1561_v4, %v1277_v18  ;;  %754 = vmatmul.f32.gmra.mxu2 %v168_v13  ;;  %949 = vmatmul.f32.gmra.mxu3 %v233_v14  ;;  %v45_v4 = vld [vmem:[%s3377_s0 + $0xc0] sm:$0xff] }
  0xce   :  { %v707_v21 = vpop.f32.mrf.mxu2  ;;  %v902_v26 = vpop.f32.mrf.mxu3 }
  0xcf   :  { %v708_v27 = vadd.f32 %v2157_v38, %v707_v21  ;;  %v903_v28 = vadd.f32 %v2157_v38, %v902_v26  ;;  %v2219_v29 = vpop.f32.mrf.mxu0  ;;  %v2221_v31 = vpop.f32.mrf.mxu1  ;;  %v46_v26 = vld [vmem:[%s3377_s0 + $0xc8] sm:$0xff] }
  0xd1   :  { %v1213_v39 = vmax.f32 %v708_v27, 0.0  ;;  %v1278_v40 = vmax.f32 %v903_v28, 0.0  ;;  %v110_v27 = vld [vmem:[%s3377_s0 + $0x2c8] sm:$0xff]  ;;  %v172_v28 = vld [vmem:[%s3377_s0 + $0x4b8] sm:$0xff] }
  0xd2   :  { %379 = vmatmul.f32.gmra.mxu0 %v43_v34  ;;  %571 = vmatmul.f32.gmra.mxu1 %v107_v35  ;;  %v237_v34 = vld [vmem:[%s3377_s0 + $0x6c0] sm:$0xff] }
  0xd3   :  { %v1488_v41 = vadd.f32 %v1487_v19, %v1213_v39  ;;  %v1563_v42 = vadd.f32 %v1562_v20, %v1278_v40  ;;  %757 = vmatmul.f32.gmra.mxu2 %v169_v36  ;;  %952 = vmatmul.f32.gmra.mxu3 %v234_v37 }
  0xd6   :  { %v710_v46 = vpop.f32.mrf.mxu2  ;;  %v905_v47 = vpop.f32.mrf.mxu3 }
  0xd7   :  { %v711_v48 = vadd.f32 %v2157_v38, %v710_v46  ;;  %v906_v49 = vadd.f32 %v2157_v38, %v905_v47  ;;  %v2240_v50 = vpop.f32.mrf.mxu0  ;;  %v2242_v51 = vpop.f32.mrf.mxu1 }
  0xd9   :  { %v1214_v56 = vmax.f32 %v711_v48, 0.0  ;;  %v1279_v57 = vmax.f32 %v906_v49, 0.0  ;;  %v47_v48 = vld [vmem:[%s3377_s0 + $0xd0] sm:$0xff] }
  0xda   :  { %382 = vmatmul.f32.gmra.mxu0 %v44_v52  ;;  %574 = vmatmul.f32.gmra.mxu1 %v108_v53  ;;  %v111_v49 = vld [vmem:[%s3377_s0 + $0x2d0] sm:$0xff]  ;;  %v173_v52 = vld [vmem:[%s3377_s0 + $0x4c0] sm:$0xff]  ;;  %v238_v53 = vld [vmem:[%s3377_s0 + $0x6c8] sm:$0xff] }
  0xdb   :  { %v1489_v60 = vadd.f32 %v1488_v41, %v1214_v56  ;;  %v1564_v61 = vadd.f32 %v1563_v42, %v1279_v57  ;;  %760 = vmatmul.f32.gmra.mxu2 %v170_v54  ;;  %955 = vmatmul.f32.gmra.mxu3 %v235_v55 }
  0xde   :  { %v713_v62 = vpop.f32.mrf.mxu2  ;;  %v908_v63 = vpop.f32.mrf.mxu3 }
  0xdf   :  { %v714_v0 = vadd.f32 %v2157_v38, %v713_v62  ;;  %v909_v1 = vadd.f32 %v2157_v38, %v908_v63  ;;  %v2258_v2 = vpop.f32.mrf.mxu0  ;;  %v2260_v3 = vpop.f32.mrf.mxu1 }
  0xe1   :  { %v1215_v8 = vmax.f32 %v714_v0, 0.0  ;;  %v1280_v11 = vmax.f32 %v909_v1, 0.0 }
  0xe2   :  { %385 = vmatmul.f32.gmra.mxu0 %v45_v4  ;;  %577 = vmatmul.f32.gmra.mxu1 %v109_v5  ;;  %v48_v5 = vld [vmem:[%s3377_s0 + $0xd8] sm:$0xff] }
  0xe3   :  { %v1490_v12 = vadd.f32 %v1489_v60, %v1215_v8  ;;  %v1565_v13 = vadd.f32 %v1564_v61, %v1280_v11  ;;  %763 = vmatmul.f32.gmra.mxu2 %v171_v6  ;;  %958 = vmatmul.f32.gmra.mxu3 %v236_v7  ;;  %v1662_v60 = vld [vmem:[%s3380_s3 + $0x68] sm:$0xff]  ;;  %v112_v6 = vld [vmem:[%s3377_s0 + $0x2d8] sm:$0xff]  ;;  %v239_v8 = vld [vmem:[%s3377_s0 + $0x6d0] sm:$0xff] }
  0xe4   :  { %1694 = vmatpush.msrb.mxu1 %v1662_v60  ;;  %v174_v7 = vld [vmem:[%s3377_s0 + $0x4c8] sm:$0xff]  ;;  %v241_v60 = vld [vmem:[%s3377_s0 + $0x6e0] sm:$0xff] }
  0xe6   :  { %v716_v14 = vpop.f32.mrf.mxu2  ;;  %v911_v15 = vpop.f32.mrf.mxu3 }
  0xe7   :  { %v717_v18 = vadd.f32 %v2157_v38, %v716_v14  ;;  %v912_v19 = vadd.f32 %v2157_v38, %v911_v15  ;;  %v2276_v20 = vpop.f32.mrf.mxu0  ;;  %v2278_v21 = vpop.f32.mrf.mxu1 }
  0xe9   :  { %v1216_v35 = vmax.f32 %v717_v18, 0.0  ;;  %v1281_v36 = vmax.f32 %v912_v19, 0.0 }
  0xea   :  { %388 = vmatmul.f32.gmra.mxu0 %v46_v26  ;;  %580 = vmatmul.f32.gmra.mxu1 %v110_v27 }
  0xeb   :  { %v1491_v37 = vadd.f32 %v1490_v12, %v1216_v35  ;;  %v1566_v39 = vadd.f32 %v1565_v13, %v1281_v36  ;;  %766 = vmatmul.f32.gmra.mxu2 %v172_v28  ;;  %961 = vmatmul.f32.gmra.mxu3 %v237_v34  ;;  %v49_v34 = vld [vmem:[%s3377_s0 + $0xe0] sm:$0xff]  ;;  %v175_v36 = vld [vmem:[%s3377_s0 + $0x4d0] sm:$0xff] }
  0xec   :  { %v113_v35 = vld [vmem:[%s3377_s0 + $0x2e0] sm:$0xff] }
  0xee   :  { %v719_v40 = vpop.f32.mrf.mxu2  ;;  %v914_v41 = vpop.f32.mrf.mxu3 }
  0xef   :  { %v720_v42 = vadd.f32 %v2157_v38, %v719_v40  ;;  %v915_v43 = vadd.f32 %v2157_v38, %v914_v41  ;;  %v2294_v46 = vpop.f32.mrf.mxu0  ;;  %v2296_v47 = vpop.f32.mrf.mxu1 }
  0xf1   :  { %v1217_v54 = vmax.f32 %v720_v42, 0.0  ;;  %v1282_v55 = vmax.f32 %v915_v43, 0.0 }
  0xf2   :  { %391 = vmatmul.f32.gmra.mxu0 %v47_v48  ;;  %583 = vmatmul.f32.gmra.mxu1 %v111_v49 }
  0xf3   :  { %v1492_v56 = vadd.f32 %v1491_v37, %v1217_v54  ;;  %v1567_v57 = vadd.f32 %v1566_v39, %v1282_v55  ;;  %769 = vmatmul.f32.gmra.mxu2 %v173_v52  ;;  %964 = vmatmul.f32.gmra.mxu3 %v238_v53  ;;  %v240_v37 = vld [vmem:[%s3377_s0 + $0x6d8] sm:$0xff]  ;;  %v50_v55 = vld [vmem:[%s3377_s0 + $0xe8] sm:$0xff] }
  0xf6   :  { %v722_v61 = vpop.f32.mrf.mxu2  ;;  %v917_v62 = vpop.f32.mrf.mxu3 }
  0xf7   :  { %v723_v63 = vadd.f32 %v2157_v38, %v722_v61  ;;  %v918_v0 = vadd.f32 %v2157_v38, %v917_v62  ;;  %v2315_v1 = vpop.f32.mrf.mxu0  ;;  %v2317_v4 = vpop.f32.mrf.mxu1 }
  0xf9   :  { %v1218_v11 = vmax.f32 %v723_v63, 0.0  ;;  %v1283_v12 = vmax.f32 %v918_v0, 0.0 }
  0xfa   :  { %394 = vmatmul.f32.gmra.mxu0 %v48_v5  ;;  %586 = vmatmul.f32.gmra.mxu1 %v112_v6  ;;  %v1661_v5 = vld [vmem:[%s3380_s3 + $0x60] sm:$0xff] }
  0xfb   :  { %v1493_v13 = vadd.f32 %v1492_v56, %v1218_v11  ;;  %v1568_v14 = vadd.f32 %v1567_v57, %v1283_v12  ;;  %772 = vmatmul.f32.gmra.mxu2 %v174_v7  ;;  %967 = vmatmul.f32.gmra.mxu3 %v239_v8  ;;  %v114_v56 = vld [vmem:[%s3377_s0 + $0x2e8] sm:$0xff]  ;;  %v176_v57 = vld [vmem:[%s3377_s0 + $0x4d8] sm:$0xff] }
  0xfc   :  { %1695 = vmatpush.msrb.mxu1 %v1661_v5 }
  0xfe   :  { %v725_v15 = vpop.f32.mrf.mxu2  ;;  %v920_v18 = vpop.f32.mrf.mxu3 }
  0xff   :  { %v726_v19 = vadd.f32 %v2157_v38, %v725_v15  ;;  %v921_v26 = vadd.f32 %v2157_v38, %v920_v18  ;;  %v2333_v27 = vpop.f32.mrf.mxu0  ;;  %v2335_v28 = vpop.f32.mrf.mxu1  ;;  %v115_v15 = vld [vmem:[%s3377_s0 + $0x2f0] sm:$0xff]  ;;  %v177_v18 = vld [vmem:[%s3377_s0 + $0x4e0] sm:$0xff] }
 0x101   :  { %v1219_v39 = vmax.f32 %v726_v19, 0.0  ;;  %v1284_v40 = vmax.f32 %v921_v26, 0.0  ;;  %v242_v19 = vld [vmem:[%s3377_s0 + $0x6e8] sm:$0xff] }
 0x102   :  { %397 = vmatmul.f32.gmra.mxu0 %v49_v34  ;;  %589 = vmatmul.f32.gmra.mxu1 %v113_v35 }
 0x103   :  { %v1494_v41 = vadd.f32 %v1493_v13, %v1219_v39  ;;  %v1569_v42 = vadd.f32 %v1568_v14, %v1284_v40  ;;  %775 = vmatmul.f32.gmra.mxu2 %v175_v36  ;;  %970 = vmatmul.f32.gmra.mxu3 %v240_v37  ;;  %v51_v14 = vld [vmem:[%s3377_s0 + $0xf0] sm:$0xff] }
 0x106   :  { %v728_v43 = vpop.f32.mrf.mxu2  ;;  %v923_v48 = vpop.f32.mrf.mxu3 }
 0x107   :  { %v729_v49 = vadd.f32 %v2157_v38, %v728_v43  ;;  %v924_v52 = vadd.f32 %v2157_v38, %v923_v48  ;;  %v2351_v53 = vpop.f32.mrf.mxu0  ;;  %v2353_v54 = vpop.f32.mrf.mxu1  ;;  %v52_v48 = vld [vmem:[%s3377_s0 + $0xf8] sm:$0xff] }
 0x109   :  { %v1220_v61 = vmax.f32 %v729_v49, 0.0  ;;  %v1285_v62 = vmax.f32 %v924_v52, 0.0  ;;  %v116_v49 = vld [vmem:[%s3377_s0 + $0x2f8] sm:$0xff]  ;;  %v178_v52 = vld [vmem:[%s3377_s0 + $0x4e8] sm:$0xff] }
 0x10a   :  { %400 = vmatmul.f32.gmra.mxu0 %v50_v55  ;;  %592 = vmatmul.f32.gmra.mxu1 %v114_v56  ;;  %v243_v55 = vld [vmem:[%s3377_s0 + $0x6f0] sm:$0xff] }
 0x10b   :  { %v1495_v63 = vadd.f32 %v1494_v41, %v1220_v61  ;;  %v1570_v0 = vadd.f32 %v1569_v42, %v1285_v62  ;;  %778 = vmatmul.f32.gmra.mxu2 %v176_v57  ;;  %973 = vmatmul.f32.gmra.mxu3 %v241_v60 }
 0x10e   :  { %v731_v6 = vpop.f32.mrf.mxu2  ;;  %v926_v7 = vpop.f32.mrf.mxu3 }
 0x10f   :  { %v732_v8 = vadd.f32 %v2157_v38, %v731_v6  ;;  %v927_v11 = vadd.f32 %v2157_v38, %v926_v7  ;;  %v2372_v12 = vpop.f32.mrf.mxu0  ;;  %v2374_v13 = vpop.f32.mrf.mxu1 }
 0x110   :  { %3388 = vst [vmem:[#allocation8_spill] sm:$0xff] %v2374_v13 }
 0x111   :  { %v1221_v26 = vmax.f32 %v732_v8, 0.0  ;;  %v1286_v34 = vmax.f32 %v927_v11, 0.0  ;;  %v53_v8 = vld [vmem:[%s3377_s0 + $0x100] sm:$0xff] }
 0x112   :  { %403 = vmatmul.f32.gmra.mxu0 %v51_v14  ;;  %595 = vmatmul.f32.gmra.mxu1 %v115_v15  ;;  %v117_v11 = vld [vmem:[%s3377_s0 + $0x300] sm:$0xff]  ;;  %v179_v14 = vld [vmem:[%s3377_s0 + $0x4f0] sm:$0xff]  ;;  %v244_v15 = vld [vmem:[%s3377_s0 + $0x6f8] sm:$0xff] }
 0x113   :  { %v1496_v35 = vadd.f32 %v1495_v63, %v1221_v26  ;;  %v1571_v36 = vadd.f32 %v1570_v0, %v1286_v34  ;;  %781 = vmatmul.f32.gmra.mxu2 %v177_v18  ;;  %976 = vmatmul.f32.gmra.mxu3 %v242_v19 }
 0x116   :  { %v734_v37 = vpop.f32.mrf.mxu2  ;;  %v929_v39 = vpop.f32.mrf.mxu3 }
 0x117   :  { %v735_v40 = vadd.f32 %v2157_v38, %v734_v37  ;;  %v930_v41 = vadd.f32 %v2157_v38, %v929_v39  ;;  %v2390_v42 = vpop.f32.mrf.mxu0  ;;  %v2392_v43 = vpop.f32.mrf.mxu1 }
 0x118   :  { %3389 = vst [vmem:[#allocation9_spill] sm:$0xff] %v2390_v42 }
 0x119   :  { %3390 = vst [vmem:[#allocation10_spill] sm:$0xff] %v2392_v43  ;;  %v1222_v56 = vmax.f32 %v735_v40, 0.0  ;;  %v1287_v57 = vmax.f32 %v930_v41, 0.0 }
 0x11a   :  { %406 = vmatmul.f32.gmra.mxu0 %v52_v48  ;;  %598 = vmatmul.f32.gmra.mxu1 %v116_v49  ;;  %v54_v48 = vld [vmem:[%s3377_s0 + $0x108] sm:$0xff] }
 0x11b   :  { %v1497_v60 = vadd.f32 %v1496_v35, %v1222_v56  ;;  %v1572_v61 = vadd.f32 %v1571_v36, %v1287_v57  ;;  %784 = vmatmul.f32.gmra.mxu2 %v178_v52  ;;  %979 = vmatmul.f32.gmra.mxu3 %v243_v55  ;;  %v118_v49 = vld [vmem:[%s3377_s0 + $0x308] sm:$0xff]  ;;  %v180_v52 = vld [vmem:[%s3377_s0 + $0x4f8] sm:$0xff]  ;;  %v245_v55 = vld [vmem:[%s3377_s0 + $0x700] sm:$0xff] }
 0x11e   :  { %v737_v62 = vpop.f32.mrf.mxu2  ;;  %v932_v63 = vpop.f32.mrf.mxu3 }
 0x11f   :  { %v738_v0 = vadd.f32 %v2157_v38, %v737_v62  ;;  %v933_v5 = vadd.f32 %v2157_v38, %v932_v63  ;;  %v2408_v6 = vpop.f32.mrf.mxu0  ;;  %v2410_v7 = vpop.f32.mrf.mxu1  ;;  %v1660_v62 = vld [vmem:[%s3380_s3 + $0x58] sm:$0xff] }
 0x120   :  { %3391 = vst [vmem:[#allocation11_spill] sm:$0xff] %v2408_v6  ;;  %1696 = vmatpush.msrb.mxu1 %v1660_v62  ;;  %v247_v62 = vld [vmem:[%s3377_s0 + $0x710] sm:$0xff] }
 0x121   :  { %3392 = vst [vmem:[#allocation12_spill] sm:$0xff] %v2410_v7  ;;  %v1223_v18 = vmax.f32 %v738_v0, 0.0  ;;  %v1288_v19 = vmax.f32 %v933_v5, 0.0 }
 0x122   :  { %409 = vmatmul.f32.gmra.mxu0 %v53_v8  ;;  %601 = vmatmul.f32.gmra.mxu1 %v117_v11 }
 0x123   :  { %v1498_v26 = vadd.f32 %v1497_v60, %v1223_v18  ;;  %v1573_v34 = vadd.f32 %v1572_v61, %v1288_v19  ;;  %787 = vmatmul.f32.gmra.mxu2 %v179_v14  ;;  %982 = vmatmul.f32.gmra.mxu3 %v244_v15  ;;  %v55_v15 = vld [vmem:[%s3377_s0 + $0x110] sm:$0xff]  ;;  %v181_v19 = vld [vmem:[%s3377_s0 + $0x500] sm:$0xff] }
 0x124   :  { %v119_v18 = vld [vmem:[%s3377_s0 + $0x310] sm:$0xff] }
 0x126   :  { %v740_v35 = vpop.f32.mrf.mxu2  ;;  %v935_v36 = vpop.f32.mrf.mxu3 }
 0x127   :  { %v741_v37 = vadd.f32 %v2157_v38, %v740_v35  ;;  %v936_v39 = vadd.f32 %v2157_v38, %v935_v36  ;;  %v2426_v40 = vpop.f32.mrf.mxu0  ;;  %v2428_v41 = vpop.f32.mrf.mxu1 }
 0x128   :  { %3393 = vst [vmem:[#allocation13_spill] sm:$0xff] %v2426_v40 }
 0x129   :  { %3394 = vst [vmem:[#allocation14_spill] sm:$0xff] %v2428_v41  ;;  %v1224_v56 = vmax.f32 %v741_v37, 0.0  ;;  %v1289_v57 = vmax.f32 %v936_v39, 0.0 }
 0x12a   :  { %412 = vmatmul.f32.gmra.mxu0 %v54_v48  ;;  %604 = vmatmul.f32.gmra.mxu1 %v118_v49 }
 0x12b   :  { %v1499_v60 = vadd.f32 %v1498_v26, %v1224_v56  ;;  %v1574_v61 = vadd.f32 %v1573_v34, %v1289_v57  ;;  %790 = vmatmul.f32.gmra.mxu2 %v180_v52  ;;  %985 = vmatmul.f32.gmra.mxu3 %v245_v55  ;;  %v246_v26 = vld [vmem:[%s3377_s0 + $0x708] sm:$0xff]  ;;  %v56_v57 = vld [vmem:[%s3377_s0 + $0x118] sm:$0xff] }
 0x12e   :  { %v743_v63 = vpop.f32.mrf.mxu2  ;;  %v938_v0 = vpop.f32.mrf.mxu3 }
 0x12f   :  { %v744_v5 = vadd.f32 %v2157_v38, %v743_v63  ;;  %v939_v8 = vadd.f32 %v2157_v38, %v938_v0  ;;  %v2447_v11 = vpop.f32.mrf.mxu0  ;;  %v2449_v14 = vpop.f32.mrf.mxu1 }
 0x130   :  { %3395 = vst [vmem:[#allocation15_spill] sm:$0xff] %v2447_v11 }
 0x131   :  { %3396 = vst [vmem:[#allocation16_spill] sm:$0xff] %v2449_v14  ;;  %v1225_v34 = vmax.f32 %v744_v5, 0.0  ;;  %v1290_v35 = vmax.f32 %v939_v8, 0.0 }
 0x132   :  { %415 = vmatmul.f32.gmra.mxu0 %v55_v15  ;;  %607 = vmatmul.f32.gmra.mxu1 %v119_v18 }
 0x133   :  { %v1500_v36 = vadd.f32 %v1499_v60, %v1225_v34  ;;  %v1575_v37 = vadd.f32 %v1574_v61, %v1290_v35  ;;  %793 = vmatmul.f32.gmra.mxu2 %v181_v19  ;;  %988 = vmatmul.f32.gmra.mxu3 %v246_v26  ;;  %v120_v60 = vld [vmem:[%s3377_s0 + $0x318] sm:$0xff]  ;;  %v182_v61 = vld [vmem:[%s3377_s0 + $0x508] sm:$0xff] }
 0x136   :  { %v746_v39 = vpop.f32.mrf.mxu2  ;;  %v941_v48 = vpop.f32.mrf.mxu3 }
 0x137   :  { %v747_v49 = vadd.f32 %v2157_v38, %v746_v39  ;;  %v942_v52 = vadd.f32 %v2157_v38, %v941_v48  ;;  %v2465_v55 = vpop.f32.mrf.mxu0  ;;  %v2467_v56 = vpop.f32.mrf.mxu1  ;;  %v57_v39 = vld [vmem:[%s3377_s0 + $0x120] sm:$0xff]  ;;  %v248_v48 = vld [vmem:[%s3377_s0 + $0x718] sm:$0xff] }
 0x138   :  { %3397 = vst [vmem:[#allocation17_spill] sm:$0xff] %v2465_v55 }
 0x139   :  { %3398 = vst [vmem:[#allocation18_spill] sm:$0xff] %v2467_v56  ;;  %v1226_v63 = vmax.f32 %v747_v49, 0.0  ;;  %v1291_v0 = vmax.f32 %v942_v52, 0.0 }
 0x13a   :  { %418 = vmatmul.f32.gmra.mxu0 %v56_v57  ;;  %610 = vmatmul.f32.gmra.mxu1 %v120_v60 }
 0x13b   :  { %v1501_v5 = vadd.f32 %v1500_v36, %v1226_v63  ;;  %v1576_v8 = vadd.f32 %v1575_v37, %v1291_v0  ;;  %796 = vmatmul.f32.gmra.mxu2 %v182_v61  ;;  %991 = vmatmul.f32.gmra.mxu3 %v247_v62  ;;  %v121_v36 = vld [vmem:[%s3377_s0 + $0x320] sm:$0xff]  ;;  %v183_v37 = vld [vmem:[%s3377_s0 + $0x510] sm:$0xff] }
 0x13e   :  { %v749_v15 = vpop.f32.mrf.mxu2  ;;  %v944_v18 = vpop.f32.mrf.mxu3 }
 0x13f   :  { %v750_v19 = vadd.f32 %v2157_v38, %v749_v15  ;;  %v945_v26 = vadd.f32 %v2157_v38, %v944_v18  ;;  %v2483_v34 = vpop.f32.mrf.mxu0  ;;  %v2485_v35 = vpop.f32.mrf.mxu1 }
 0x140   :  { %3399 = vst [vmem:[#allocation19_spill] sm:$0xff] %v2483_v34 }
 0x141   :  { %3400 = vst [vmem:[#allocation20_spill] sm:$0xff] %v2485_v35  ;;  %v1227_v49 = vmax.f32 %v750_v19, 0.0  ;;  %v1292_v52 = vmax.f32 %v945_v26, 0.0  ;;  %v58_v19 = vld [vmem:[%s3377_s0 + $0x128] sm:$0xff]  ;;  %v249_v26 = vld [vmem:[%s3377_s0 + $0x720] sm:$0xff] }
 0x142   :  { %421 = vmatmul.f32.gmra.mxu0 %v57_v39  ;;  %613 = vmatmul.f32.gmra.mxu1 %v121_v36 }
 0x143   :  { %v1502_v57 = vadd.f32 %v1501_v5, %v1227_v49  ;;  %v1577_v60 = vadd.f32 %v1576_v8, %v1292_v52  ;;  %799 = vmatmul.f32.gmra.mxu2 %v183_v37  ;;  %994 = vmatmul.f32.gmra.mxu3 %v248_v48  ;;  %v122_v5 = vld [vmem:[%s3377_s0 + $0x328] sm:$0xff]  ;;  %v184_v8 = vld [vmem:[%s3377_s0 + $0x518] sm:$0xff]  ;;  %v1659_v49 = vld [vmem:[%s3380_s3 + $0x50] sm:$0xff] }
 0x144   :  { %1697 = vmatpush.msrb.mxu1 %v1659_v49 }
 0x146   :  { %v752_v61 = vpop.f32.mrf.mxu2  ;;  %v947_v62 = vpop.f32.mrf.mxu3 }
 0x147   :  { %v753_v63 = vadd.f32 %v2157_v38, %v752_v61  ;;  %v948_v0 = vadd.f32 %v2157_v38, %v947_v62  ;;  %v2501_v15 = vpop.f32.mrf.mxu0  ;;  %v2503_v18 = vpop.f32.mrf.mxu1 }
 0x148   :  { %3401 = vst [vmem:[#allocation21_spill] sm:$0xff] %v2501_v15 }
 0x149   :  { %3402 = vst [vmem:[#allocation22_spill] sm:$0xff] %v2503_v18  ;;  %v1228_v39 = vmax.f32 %v753_v63, 0.0  ;;  %v1293_v36 = vmax.f32 %v948_v0, 0.0  ;;  %v185_v0 = vld [vmem:[%s3377_s0 + $0x520] sm:$0xff] }
 0x14a   :  { %424 = vmatmul.f32.gmra.mxu0 %v58_v19  ;;  %616 = vmatmul.f32.gmra.mxu1 %v122_v5  ;;  %v250_v19 = vld [vmem:[%s3377_s0 + $0x728] sm:$0xff] }
 0x14b   :  { %v1503_v37 = vadd.f32 %v1502_v57, %v1228_v39  ;;  %v1578_v48 = vadd.f32 %v1577_v60, %v1293_v36  ;;  %802 = vmatmul.f32.gmra.mxu2 %v184_v8  ;;  %997 = vmatmul.f32.gmra.mxu3 %v249_v26  ;;  %v59_v57 = vld [vmem:[%s3377_s0 + $0x130] sm:$0xff] }
 0x14c   :  { %v123_v60 = vld [vmem:[%s3377_s0 + $0x330] sm:$0xff] }
 0x14e   :  { %v755_v52 = vpop.f32.mrf.mxu2  ;;  %v950_v61 = vpop.f32.mrf.mxu3 }
 0x14f   :  { %v756_v62 = vadd.f32 %v2157_v38, %v755_v52  ;;  %v951_v23 = vadd.f32 %v2157_v38, %v950_v61  ;;  %v2522_v30 = vpop.f32.mrf.mxu0  ;;  %v2524_v63 = vpop.f32.mrf.mxu1 }
 0x150   :  { %3403 = vst [vmem:[#allocation23_spill] sm:$0xff] %v2522_v30 }
 0x151   :  { %3404 = vst [vmem:[#allocation24_spill] sm:$0xff] %v2524_v63  ;;  %v1229_v5 = vmax.f32 %v756_v62, 0.0  ;;  %v1294_v8 = vmax.f32 %v951_v23, 0.0  ;;  %v60_v23 = vld [vmem:[%s3377_s0 + $0x138] sm:$0xff]  ;;  %v251_v62 = vld [vmem:[%s3377_s0 + $0x730] sm:$0xff] }
 0x152   :  { %427 = vmatmul.f32.gmra.mxu0 %v59_v57  ;;  %619 = vmatmul.f32.gmra.mxu1 %v123_v60 }
 0x153   :  { %v1504_v26 = vadd.f32 %v1503_v37, %v1229_v5  ;;  %v1579_v39 = vadd.f32 %v1578_v48, %v1294_v8  ;;  %805 = vmatmul.f32.gmra.mxu2 %v185_v0  ;;  %1000 = vmatmul.f32.gmra.mxu3 %v250_v19  ;;  %v124_v37 = vld [vmem:[%s3377_s0 + $0x338] sm:$0xff]  ;;  %v186_v48 = vld [vmem:[%s3377_s0 + $0x528] sm:$0xff] }
 0x156   :  { %v758_v36 = vpop.f32.mrf.mxu2  ;;  %v953_v49 = vpop.f32.mrf.mxu3 }
 0x157   :  { %v759_v52 = vadd.f32 %v2157_v38, %v758_v36  ;;  %v954_v61 = vadd.f32 %v2157_v38, %v953_v49  ;;  %v2540_v22 = vpop.f32.mrf.mxu0  ;;  %v2542_v63 = vpop.f32.mrf.mxu1 }
 0x158   :  { %3405 = vst [vmem:[#allocation25_spill] sm:$0xff] %v2540_v22 }
 0x159   :  { %3406 = vst [vmem:[#allocation26_spill] sm:$0xff] %v2542_v63  ;;  %v1230_v57 = vmax.f32 %v759_v52, 0.0  ;;  %v1295_v60 = vmax.f32 %v954_v61, 0.0  ;;  %v61_v52 = vld [vmem:[%s3377_s0 + $0x140] sm:$0xff]  ;;  %v252_v61 = vld [vmem:[%s3377_s0 + $0x738] sm:$0xff] }
 0x15a   :  { %430 = vmatmul.f32.gmra.mxu0 %v60_v23  ;;  %622 = vmatmul.f32.gmra.mxu1 %v124_v37 }
 0x15b   :  { %v1505_v0 = vadd.f32 %v1504_v26, %v1230_v57  ;;  %v1580_v19 = vadd.f32 %v1579_v39, %v1295_v60  ;;  %808 = vmatmul.f32.gmra.mxu2 %v186_v48  ;;  %1003 = vmatmul.f32.gmra.mxu3 %v251_v62  ;;  %v125_v26 = vld [vmem:[%s3377_s0 + $0x340] sm:$0xff]  ;;  %v187_v39 = vld [vmem:[%s3377_s0 + $0x530] sm:$0xff] }
 0x15e   :  { %v761_v5 = vpop.f32.mrf.mxu2  ;;  %v956_v8 = vpop.f32.mrf.mxu3 }
 0x15f   :  { %v762_v36 = vadd.f32 %v2157_v38, %v761_v5  ;;  %v957_v49 = vadd.f32 %v2157_v38, %v956_v8  ;;  %v2558_v63 = vpop.f32.mrf.mxu0  ;;  %v2560_v22 = vpop.f32.mrf.mxu1 }
 0x160   :  { %3407 = vst [vmem:[#allocation27_spill] sm:$0xff] %v2558_v63 }
 0x161   :  { %3408 = vst [vmem:[#allocation28_spill] sm:$0xff] %v2560_v22  ;;  %v1231_v23 = vmax.f32 %v762_v36, 0.0  ;;  %v1296_v37 = vmax.f32 %v957_v49, 0.0  ;;  %v62_v36 = vld [vmem:[%s3377_s0 + $0x148] sm:$0xff]  ;;  %v253_v49 = vld [vmem:[%s3377_s0 + $0x740] sm:$0xff] }
 0x162   :  { %433 = vmatmul.f32.gmra.mxu0 %v61_v52  ;;  %625 = vmatmul.f32.gmra.mxu1 %v125_v26 }
 0x163   :  { %v1506_v48 = vadd.f32 %v1505_v0, %v1231_v23  ;;  %v1581_v62 = vadd.f32 %v1580_v19, %v1296_v37  ;;  %811 = vmatmul.f32.gmra.mxu2 %v187_v39  ;;  %1006 = vmatmul.f32.gmra.mxu3 %v252_v61  ;;  %v126_v0 = vld [vmem:[%s3377_s0 + $0x348] sm:$0xff]  ;;  %v188_v19 = vld [vmem:[%s3377_s0 + $0x538] sm:$0xff] }
 0x164   :  { %v1658_v23 = vld [vmem:[%s3380_s3 + $0x48] sm:$0xff] }
 0x165   :  { %1698 = vmatpush.msrb.mxu1 %v1658_v23 }
 0x166   :  { %v764_v57 = vpop.f32.mrf.mxu2  ;;  %v959_v60 = vpop.f32.mrf.mxu3 }
 0x167   :  { %v765_v5 = vadd.f32 %v2157_v38, %v764_v57  ;;  %v960_v8 = vadd.f32 %v2157_v38, %v959_v60  ;;  %v2576_v22 = vpop.f32.mrf.mxu0  ;;  %v2578_v63 = vpop.f32.mrf.mxu1 }
 0x168   :  { %3409 = vst [vmem:[#allocation29_spill] sm:$0xff] %v2576_v22 }
 0x169   :  { %3410 = vst [vmem:[#allocation30_spill] sm:$0xff] %v2578_v63  ;;  %v1232_v52 = vmax.f32 %v765_v5, 0.0  ;;  %v1297_v26 = vmax.f32 %v960_v8, 0.0  ;;  %v189_v8 = vld [vmem:[%s3377_s0 + $0x540] sm:$0xff] }
 0x16a   :  { %436 = vmatmul.f32.gmra.mxu0 %v62_v36  ;;  %628 = vmatmul.f32.gmra.mxu1 %v126_v0  ;;  %v254_v36 = vld [vmem:[%s3377_s0 + $0x748] sm:$0xff] }
 0x16b   :  { %v1507_v39 = vadd.f32 %v1506_v48, %v1232_v52  ;;  %v1582_v61 = vadd.f32 %v1581_v62, %v1297_v26  ;;  %814 = vmatmul.f32.gmra.mxu2 %v188_v19  ;;  %1009 = vmatmul.f32.gmra.mxu3 %v253_v49  ;;  %v63_v48 = vld [vmem:[%s3377_s0 + $0x150] sm:$0xff] }
 0x16c   :  { %v127_v62 = vld [vmem:[%s3377_s0 + $0x350] sm:$0xff] }
 0x16e   :  { %v767_v37 = vpop.f32.mrf.mxu2  ;;  %v962_v57 = vpop.f32.mrf.mxu3 }
 0x16f   :  { %v768_v60 = vadd.f32 %v2157_v38, %v767_v37  ;;  %v963_v63 = vadd.f32 %v2157_v38, %v962_v57  ;;  %v2597_v22 = vpop.f32.mrf.mxu0  ;;  %v2599_v5 = vpop.f32.mrf.mxu1 }
 0x170   :  { %3411 = vst [vmem:[#allocation31_spill] sm:$0xff] %v2597_v22 }
 0x171   :  { %3412 = vst [vmem:[#allocation32_spill] sm:$0xff] %v2599_v5  ;;  %v1233_v0 = vmax.f32 %v768_v60, 0.0  ;;  %v1298_v19 = vmax.f32 %v963_v63, 0.0  ;;  %v64_v63 = vld [vmem:[%s3377_s0 + $0x158] sm:$0xff]  ;;  %v255_v60 = vld [vmem:[%s3377_s0 + $0x750] sm:$0xff] }
 0x172   :  { %439 = vmatmul.f32.gmra.mxu0 %v63_v48  ;;  %631 = vmatmul.f32.gmra.mxu1 %v127_v62 }
 0x173   :  { %v1508_v49 = vadd.f32 %v1507_v39, %v1233_v0  ;;  %v1583_v52 = vadd.f32 %v1582_v61, %v1298_v19  ;;  %817 = vmatmul.f32.gmra.mxu2 %v189_v8  ;;  %1012 = vmatmul.f32.gmra.mxu3 %v254_v36  ;;  %v128_v39 = vld [vmem:[%s3377_s0 + $0x358] sm:$0xff]  ;;  %v190_v61 = vld [vmem:[%s3377_s0 + $0x548] sm:$0xff] }
 0x176   :  { %v770_v26 = vpop.f32.mrf.mxu2  ;;  %v965_v23 = vpop.f32.mrf.mxu3 }
 0x177   :  { %v771_v37 = vadd.f32 %v2157_v38, %v770_v26  ;;  %v966_v57 = vadd.f32 %v2157_v38, %v965_v23  ;;  %v2615_v5 = vpop.f32.mrf.mxu0  ;;  %v2617_v22 = vpop.f32.mrf.mxu1 }
 0x178   :  { %3413 = vst [vmem:[#allocation33_spill] sm:$0xff] %v2615_v5 }
 0x179   :  { %3414 = vst [vmem:[#allocation34_spill] sm:$0xff] %v2617_v22  ;;  %v1234_v48 = vmax.f32 %v771_v37, 0.0  ;;  %v1299_v62 = vmax.f32 %v966_v57, 0.0  ;;  %v65_v37 = vld [vmem:[%s3377_s0 + $0x160] sm:$0xff]  ;;  %v256_v57 = vld [vmem:[%s3377_s0 + $0x758] sm:$0xff] }
 0x17a   :  { %442 = vmatmul.f32.gmra.mxu0 %v64_v63  ;;  %634 = vmatmul.f32.gmra.mxu1 %v128_v39 }
 0x17b   :  { %v1509_v8 = vadd.f32 %v1508_v49, %v1234_v48  ;;  %v1584_v36 = vadd.f32 %v1583_v52, %v1299_v62  ;;  %820 = vmatmul.f32.gmra.mxu2 %v190_v61  ;;  %1015 = vmatmul.f32.gmra.mxu3 %v255_v60  ;;  %v129_v49 = vld [vmem:[%s3377_s0 + $0x360] sm:$0xff]  ;;  %v191_v52 = vld [vmem:[%s3377_s0 + $0x550] sm:$0xff] }
 0x17e   :  { %v773_v0 = vpop.f32.mrf.mxu2  ;;  %v968_v19 = vpop.f32.mrf.mxu3 }
 0x17f   :  { %v774_v26 = vadd.f32 %v2157_v38, %v773_v0  ;;  %v969_v23 = vadd.f32 %v2157_v38, %v968_v19  ;;  %v2633_v22 = vpop.f32.mrf.mxu0  ;;  %v2635_v5 = vpop.f32.mrf.mxu1 }
 0x180   :  { %3415 = vst [vmem:[#allocation35_spill] sm:$0xff] %v2633_v22 }
 0x181   :  { %3416 = vst [vmem:[#allocation36_spill] sm:$0xff] %v2635_v5  ;;  %v1235_v63 = vmax.f32 %v774_v26, 0.0  ;;  %v1300_v39 = vmax.f32 %v969_v23, 0.0  ;;  %v66_v26 = vld [vmem:[%s3377_s0 + $0x168] sm:$0xff]  ;;  %v257_v23 = vld [vmem:[%s3377_s0 + $0x760] sm:$0xff] }
 0x182   :  { %445 = vmatmul.f32.gmra.mxu0 %v65_v37  ;;  %637 = vmatmul.f32.gmra.mxu1 %v129_v49 }
 0x183   :  { %v1510_v61 = vadd.f32 %v1509_v8, %v1235_v63  ;;  %v1585_v60 = vadd.f32 %v1584_v36, %v1300_v39  ;;  %823 = vmatmul.f32.gmra.mxu2 %v191_v52  ;;  %1018 = vmatmul.f32.gmra.mxu3 %v256_v57  ;;  %v130_v8 = vld [vmem:[%s3377_s0 + $0x368] sm:$0xff]  ;;  %v192_v36 = vld [vmem:[%s3377_s0 + $0x558] sm:$0xff] }
 0x186   :  { %v776_v48 = vpop.f32.mrf.mxu2  ;;  %v971_v62 = vpop.f32.mrf.mxu3 }
 0x187   :  { %v777_v0 = vadd.f32 %v2157_v38, %v776_v48  ;;  %v972_v19 = vadd.f32 %v2157_v38, %v971_v62  ;;  %v2651_v5 = vpop.f32.mrf.mxu0  ;;  %v2653_v22 = vpop.f32.mrf.mxu1 }
 0x188   :  { %3417 = vst [vmem:[#allocation37_spill] sm:$0xff] %v2651_v5 }
 0x189   :  { %3418 = vst [vmem:[#allocation38_spill] sm:$0xff] %v2653_v22  ;;  %v1236_v37 = vmax.f32 %v777_v0, 0.0  ;;  %v1301_v49 = vmax.f32 %v972_v19, 0.0  ;;  %v67_v0 = vld [vmem:[%s3377_s0 + $0x170] sm:$0xff] }
 0x18a   :  { %448 = vmatmul.f32.gmra.mxu0 %v66_v26  ;;  %640 = vmatmul.f32.gmra.mxu1 %v130_v8 }
 0x18b   :  { %v1511_v52 = vadd.f32 %v1510_v61, %v1236_v37  ;;  %v1586_v57 = vadd.f32 %v1585_v60, %v1301_v49  ;;  %826 = vmatmul.f32.gmra.mxu2 %v192_v36  ;;  %1021 = vmatmul.f32.gmra.mxu3 %v257_v23  ;;  %v131_v61 = vld [vmem:[%s3377_s0 + $0x370] sm:$0xff]  ;;  %v193_v60 = vld [vmem:[%s3377_s0 + $0x560] sm:$0xff] }
 0x18c   :  { %v2688_v49 = vld [vmem:[%s3379_s2] ss:$0 sm:$0xff] }
 0x18e   :  { %v779_v63 = vpop.f32.mrf.mxu2  ;;  %v974_v39 = vpop.f32.mrf.mxu3 }
 0x18f   :  { %v780_v48 = vadd.f32 %v2157_v38, %v779_v63  ;;  %v975_v62 = vadd.f32 %v2157_v38, %v974_v39  ;;  %v2669_v22 = vpop.f32.mrf.mxu0  ;;  %v2671_v5 = vpop.f32.mrf.mxu1  ;;  %v258_v38 = vld [vmem:[%s3377_s0 + $0x768] sm:$0xff] }
 0x190   :  { %3419 = vst [vmem:[#allocation39_spill] sm:$0xff] %v2669_v22 }
 0x191   :  { %3420 = vst [vmem:[#allocation40_spill] sm:$0xff] %v2671_v5  ;;  %v1237_v19 = vmax.f32 %v780_v48, 0.0  ;;  %v1302_v26 = vmax.f32 %v975_v62, 0.0  ;;  %v1657_v62 = vld [vmem:[%s3380_s3 + $0x40] sm:$0xff] }
 0x192   :  { %451 = vmatmul.f32.gmra.mxu0 %v67_v0  ;;  %643 = vmatmul.f32.gmra.mxu1 %v131_v61  ;;  %v194_v0 = vld [vmem:[%s3377_s0 + $0x568] sm:$0xff]  ;;  %v259_v61 = vld [vmem:[%s3377_s0 + $0x770] sm:$0xff] }
 0x193   :  { %v1512_v8 = vadd.f32 %v1511_v52, %v1237_v19  ;;  %v1587_v36 = vadd.f32 %v1586_v57, %v1302_v26  ;;  %829 = vmatmul.f32.gmra.mxu2 %v193_v60  ;;  %1024 = vmatmul.f32.gmra.mxu3 %v258_v38  ;;  %v68_v52 = vld [vmem:[%s3377_s0 + $0x178] sm:$0xff] }
 0x194   :  { %v132_v57 = vld [vmem:[%s3377_s0 + $0x378] sm:$0xff]  ;;  %1699 = vmatpush.msrb.mxu1 %v1657_v62 }
 0x196   :  { %v782_v23 = vpop.f32.mrf.mxu2  ;;  %v977_v37 = vpop.f32.mrf.mxu3 }
 0x197   :  { %v783_v63 = vadd.f32 %v2688_v49, %v782_v23  ;;  %v978_v39 = vadd.f32 %v2688_v49, %v977_v37  ;;  %v2692_v5 = vpop.f32.mrf.mxu0  ;;  %v2694_v48 = vpop.f32.mrf.mxu1 }
 0x198   :  { %3421 = vst [vmem:[#allocation41_spill] sm:$0xff] %v2692_v5 }
 0x199   :  { %3422 = vst [vmem:[#allocation42_spill] sm:$0xff] %v2694_v48  ;;  %v1238_v60 = vmax.f32 %v783_v63, 0.0  ;;  %v1303_v38 = vmax.f32 %v978_v39, 0.0  ;;  %v69_v63 = vld [vmem:[%s3377_s0 + $0x180] sm:$0xff]  ;;  %v260_v39 = vld [vmem:[%s3377_s0 + $0x778] sm:$0xff] }
 0x19a   :  { %454 = vmatmul.f32.gmra.mxu0 %v68_v52  ;;  %646 = vmatmul.f32.gmra.mxu1 %v132_v57 }
 0x19b   :  { %v1513_v19 = vadd.f32 %v1512_v8, %v1238_v60  ;;  %v1588_v26 = vadd.f32 %v1587_v36, %v1303_v38  ;;  %832 = vmatmul.f32.gmra.mxu2 %v194_v0  ;;  %1027 = vmatmul.f32.gmra.mxu3 %v259_v61  ;;  %v133_v8 = vld [vmem:[%s3377_s0 + $0x380] sm:$0xff]  ;;  %v195_v36 = vld [vmem:[%s3377_s0 + $0x570] sm:$0xff] }
 0x19e   :  { %v785_v23 = vpop.f32.mrf.mxu2  ;;  %v980_v37 = vpop.f32.mrf.mxu3 }
 0x19f   :  { %v786_v48 = vadd.f32 %v2688_v49, %v785_v23  ;;  %v981_v5 = vadd.f32 %v2688_v49, %v980_v37  ;;  %v2713_v22 = vpop.f32.mrf.mxu0  ;;  %v2715_v30 = vpop.f32.mrf.mxu1 }
 0x1a1   :  { %v1239_v52 = vmax.f32 %v786_v48, 0.0  ;;  %v1304_v57 = vmax.f32 %v981_v5, 0.0  ;;  %v70_v5 = vld [vmem:[%s3377_s0 + $0x188] sm:$0xff] }
 0x1a2   :  { %457 = vmatmul.f32.gmra.mxu0 %v69_v63  ;;  %649 = vmatmul.f32.gmra.mxu1 %v133_v8  ;;  %v134_v48 = vld [vmem:[%s3377_s0 + $0x388] sm:$0xff] }
 0x1a3   :  { %v1514_v62 = vadd.f32 %v1513_v19, %v1239_v52  ;;  %v1589_v0 = vadd.f32 %v1588_v26, %v1304_v57  ;;  %835 = vmatmul.f32.gmra.mxu2 %v195_v36  ;;  %1030 = vmatmul.f32.gmra.mxu3 %v260_v39  ;;  %v196_v19 = vld [vmem:[%s3377_s0 + $0x578] sm:$0xff]  ;;  %v261_v26 = vld [vmem:[%s3377_s0 + $0x780] sm:$0xff] }
 0x1a4   :  { %v1656_v52 = vld [vmem:[%s3380_s3 + $0x38] sm:$0xff] }
 0x1a5   :  { %1700 = vmatpush.msrb.mxu1 %v1656_v52 }
 0x1a6   :  { %v788_v61 = vpop.f32.mrf.mxu2  ;;  %v983_v60 = vpop.f32.mrf.mxu3 }
 0x1a7   :  { %v789_v38 = vadd.f32 %v2688_v49, %v788_v61  ;;  %v984_v23 = vadd.f32 %v2688_v49, %v983_v60  ;;  %v2731_v37 = vpop.f32.mrf.mxu0  ;;  %v2733_v18 = vpop.f32.mrf.mxu1 }
 0x1a9   :  { %v1240_v63 = vmax.f32 %v789_v38, 0.0  ;;  %v1305_v8 = vmax.f32 %v984_v23, 0.0  ;;  %v197_v23 = vld [vmem:[%s3377_s0 + $0x580] sm:$0xff] }
 0x1aa   :  { %460 = vmatmul.f32.gmra.mxu0 %v70_v5  ;;  %652 = vmatmul.f32.gmra.mxu1 %v134_v48  ;;  %v262_v5 = vld [vmem:[%s3377_s0 + $0x788] sm:$0xff] }
 0x1ab   :  { %v1515_v36 = vadd.f32 %v1514_v62, %v1240_v63  ;;  %v2747_v39 = vadd.f32 %v1589_v0, %v1305_v8  ;;  %838 = vmatmul.f32.gmra.mxu2 %v196_v19  ;;  %1033 = vmatmul.f32.gmra.mxu3 %v261_v26  ;;  %v71_v62 = vld [vmem:[%s3377_s0 + $0x190] sm:$0xff] }
 0x1ac   :  { %v135_v0 = vld [vmem:[%s3377_s0 + $0x390] sm:$0xff] }
 0x1ad   :  { %3423 = vst [vmem:[#allocation43_spill] sm:$0xff] %v2747_v39 }
 0x1ae   :  { %v791_v57 = vpop.f32.mrf.mxu2  ;;  %v986_v61 = vpop.f32.mrf.mxu3 }
 0x1af   :  { %v792_v60 = vadd.f32 %v2688_v49, %v791_v57  ;;  %v2753_v15 = vpop.f32.mrf.mxu0  ;;  %v2755_v38 = vpop.f32.mrf.mxu1  ;;  %v987_v26 = vadd.f32 %v2688_v49, %v986_v61  ;;  %v198_v61 = vld [vmem:[%s3377_s0 + $0x588] sm:$0xff] }
 0x1b1   :  { %v1241_v48 = vmax.f32 %v792_v60, 0.0  ;;  %v72_v60 = vld [vmem:[%s3377_s0 + $0x198] sm:$0xff] }
 0x1b2   :  { %463 = vmatmul.f32.gmra.mxu0 %v71_v62  ;;  %655 = vmatmul.f32.gmra.mxu1 %v135_v0  ;;  %v263_v62 = vld [vmem:[%s3377_s0 + $0x790] sm:$0xff]  ;;  %v1306_v0 = vmax.f32 %v987_v26, 0.0  ;;  %v73_v26 = vld [vmem:[%s3377_s0 + $0x1a0] sm:$0xff] }
 0x1b3   :  { %v2769_v19 = vadd.f32 %v1515_v36, %v1241_v48  ;;  %841 = vmatmul.f32.gmra.mxu2 %v197_v23  ;;  %1036 = vmatmul.f32.gmra.mxu3 %v262_v5  ;;  %v136_v36 = vld [vmem:[%s3377_s0 + $0x398] sm:$0xff] }
 0x1b5   :  { %3424 = vst [vmem:[#allocation44_spill] sm:$0xff] %v2769_v19 }
 0x1b6   :  { %v794_v63 = vpop.f32.mrf.mxu2  ;;  %v989_v8 = vpop.f32.mrf.mxu3 }
 0x1b7   :  { %v990_v52 = vadd.f32 %v2688_v49, %v989_v8  ;;  %v2773_v57 = vpop.f32.mrf.mxu0  ;;  %v2775_v39 = vpop.f32.mrf.mxu1  ;;  %v795_v48 = vadd.f32 %v2688_v49, %v794_v63  ;;  %v199_v63 = vld [vmem:[%s3377_s0 + $0x590] sm:$0xff] }
 0x1b9   :  { %v1307_v23 = vmax.f32 %v990_v52, 0.0  ;;  %v137_v52 = vld [vmem:[%s3377_s0 + $0x3a0] sm:$0xff] }
 0x1ba   :  { %466 = vmatmul.f32.gmra.mxu0 %v72_v60  ;;  %658 = vmatmul.f32.gmra.mxu1 %v136_v36  ;;  %v1242_v60 = vmax.f32 %v795_v48, 0.0  ;;  %v606_v48 = vadd.f32 %v2688_v49, %v2733_v18 }
 0x1bb   :  { %v1597_v5 = vadd.f32 %v1307_v23, %v1306_v0  ;;  %844 = vmatmul.f32.gmra.mxu2 %v198_v61  ;;  %1039 = vmatmul.f32.gmra.mxu3 %v263_v62 }
 0x1be   :  { %v797_v8 = vpop.f32.mrf.mxu2  ;;  %v992_v19 = vpop.f32.mrf.mxu3 }
 0x1bf   :  { %v798_v35 = vadd.f32 %v2688_v49, %v797_v8  ;;  %v993_v34 = vadd.f32 %v2688_v49, %v992_v19  ;;  %v2792_v56 = vpop.f32.mrf.mxu0  ;;  %v2794_v55 = vpop.f32.mrf.mxu1  ;;  %v264_v19 = vld [vmem:[%s3377_s0 + $0x798] sm:$0xff] }
 0x1c1   :  { %v1243_v36 = vmax.f32 %v798_v35, 0.0  ;;  %v1308_v61 = vmax.f32 %v993_v34, 0.0  ;;  %v74_v35 = vld [vmem:[%s3377_s0 + $0x1a8] sm:$0xff] }
 0x1c2   :  { %469 = vmatmul.f32.gmra.mxu0 %v73_v26  ;;  %661 = vmatmul.f32.gmra.mxu1 %v137_v52  ;;  %v138_v34 = vld [vmem:[%s3377_s0 + $0x3a8] sm:$0xff]  ;;  %v200_v26 = vld [vmem:[%s3377_s0 + $0x598] sm:$0xff]  ;;  %v265_v52 = vld [vmem:[%s3377_s0 + $0x7a0] sm:$0xff] }
 0x1c3   :  { %v1523_v62 = vadd.f32 %v1243_v36, %v1242_v60  ;;  %v1598_v0 = vadd.f32 %v1597_v5, %v1308_v61  ;;  %847 = vmatmul.f32.gmra.mxu2 %v199_v63  ;;  %1042 = vmatmul.f32.gmra.mxu3 %v264_v19  ;;  %v603_v5 = vadd.f32 %v2688_v49, %v2715_v30  ;;  %v1655_v30 = vld [vmem:[%s3380_s3 + $0x30] sm:$0xff]  ;;  %v1179_v61 = vmax.f32 %v606_v48, 0.0 }
 0x1c4   :  { %1701 = vmatpush.msrb.mxu1 %v1655_v30  ;;  %v414_v30 = vadd.f32 %v2688_v49, %v2731_v37  ;;  %v420_v37 = vadd.f32 %v2688_v49, %v2773_v57  ;;  %v202_v57 = vld [vmem:[%s3377_s0 + $0x5a8] sm:$0xff] }
 0x1c5   :  { %v1178_v18 = vmax.f32 %v603_v5, 0.0 }
 0x1c6   :  { %v800_v23 = vpop.f32.mrf.mxu2  ;;  %v995_v8 = vpop.f32.mrf.mxu3  ;;  %v1115_v6 = vmax.f32 %v414_v30, 0.0 }
 0x1c7   :  { %v801_v14 = vadd.f32 %v2688_v49, %v800_v23  ;;  %v996_v11 = vadd.f32 %v2688_v49, %v995_v8  ;;  %v2810_v41 = vpop.f32.mrf.mxu0  ;;  %v617_v40 = vpop.f32.mrf.mxu1  ;;  %v609_v23 = vadd.f32 %v2688_v49, %v2755_v38  ;;  %v1449_v5 = vadd.f32 %v1179_v61, %v1178_v18 }
 0x1c8   :  { %v612_v38 = vadd.f32 %v2688_v49, %v2775_v39 }
 0x1c9   :  { %v1244_v63 = vmax.f32 %v801_v14, 0.0  ;;  %v1309_v19 = vmax.f32 %v996_v11, 0.0  ;;  %v1180_v48 = vmax.f32 %v609_v23, 0.0 }
 0x1ca   :  { %472 = vmatmul.f32.gmra.mxu0 %v74_v35  ;;  %664 = vmatmul.f32.gmra.mxu1 %v138_v34  ;;  %v75_v35 = vld [vmem:[%s3377_s0 + $0x1b0] sm:$0xff]  ;;  %v1181_v23 = vmax.f32 %v612_v38, 0.0 }
 0x1cb   :  { %v1524_v60 = vadd.f32 %v1523_v62, %v1244_v63  ;;  %v1599_v36 = vadd.f32 %v1598_v0, %v1309_v19  ;;  %850 = vmatmul.f32.gmra.mxu2 %v200_v26  ;;  %1045 = vmatmul.f32.gmra.mxu3 %v265_v52  ;;  %v139_v34 = vld [vmem:[%s3377_s0 + $0x3b0] sm:$0xff]  ;;  %v201_v26 = vld [vmem:[%s3377_s0 + $0x5a0] sm:$0xff]  ;;  %v411_v19 = vadd.f32 %v2688_v49, %v2713_v22 }
 0x1cc   :  { %v1450_v61 = vadd.f32 %v1449_v5, %v1180_v48  ;;  %v618_v22 = vadd.f32 %v2688_v49, %v617_v40  ;;  %v140_v40 = vld [vmem:[%s3377_s0 + $0x3b8] sm:$0xff] }
 0x1ce   :  { %v803_v8 = vpop.f32.mrf.mxu2  ;;  %v998_v7 = vpop.f32.mrf.mxu3 }
 0x1cf   :  { %v804_v11 = vadd.f32 %v2688_v49, %v803_v8  ;;  %v999_v14 = vadd.f32 %v2688_v49, %v998_v7  ;;  %v428_v62 = vpop.f32.mrf.mxu0  ;;  %v620_v0 = vpop.f32.mrf.mxu1  ;;  %v266_v7 = vld [vmem:[%s3377_s0 + $0x7a8] sm:$0xff]  ;;  %v615_v8 = vadd.f32 %v2688_v49, %v2794_v55  ;;  %v76_v55 = vld [vmem:[%s3377_s0 + $0x1b8] sm:$0xff] }
 0x1d1   :  { %v1245_v52 = vmax.f32 %v804_v11, 0.0  ;;  %v1310_v63 = vmax.f32 %v999_v14, 0.0  ;;  %v417_v11 = vadd.f32 %v2688_v49, %v2753_v15  ;;  %v1114_v14 = vmax.f32 %v411_v19, 0.0 }
 0x1d2   :  { %475 = vmatmul.f32.gmra.mxu0 %v75_v35  ;;  %667 = vmatmul.f32.gmra.mxu1 %v139_v34  ;;  %v1451_v15 = vadd.f32 %v1450_v61, %v1181_v23  ;;  %v1182_v38 = vmax.f32 %v615_v8, 0.0  ;;  %v1117_v23 = vmax.f32 %v420_v37, 0.0 }
 0x1d3   :  { %v1525_v18 = vadd.f32 %v1524_v60, %v1245_v52  ;;  %v1600_v39 = vadd.f32 %v1599_v36, %v1310_v63  ;;  %853 = vmatmul.f32.gmra.mxu2 %v201_v26  ;;  %1048 = vmatmul.f32.gmra.mxu3 %v266_v7  ;;  %v621_v26 = vadd.f32 %v2688_v49, %v620_v0  ;;  %v267_v7 = vld [vmem:[%s3377_s0 + $0x7b0] sm:$0xff]  ;;  %v1116_v52 = vmax.f32 %v417_v11, 0.0 }
 0x1d4   :  { %v423_v63 = vadd.f32 %v2688_v49, %v2792_v56  ;;  %v1375_v0 = vadd.f32 %v1115_v6, %v1114_v14  ;;  %v1452_v43 = vadd.f32 %v1451_v15, %v1182_v38  ;;  %v426_v11 = vadd.f32 %v2688_v49, %v2810_v41  ;;  %v77_v41 = vld [vmem:[%s3377_s0 + $0x1c0] sm:$0xff]  ;;  %v203_v38 = vld [vmem:[%s3377_s0 + $0x5b0] sm:$0xff] }
 0x1d5   :  { %v1184_v42 = vmax.f32 %v621_v26, 0.0  ;;  %v268_v26 = vld [vmem:[%s3377_s0 + $0x7b8] sm:$0xff] }
 0x1d6   :  { %v806_v35 = vpop.f32.mrf.mxu2  ;;  %v1001_v34 = vpop.f32.mrf.mxu3  ;;  %v1376_v13 = vadd.f32 %v1375_v0, %v1116_v52  ;;  %v1118_v56 = vmax.f32 %v423_v63, 0.0  ;;  %v1119_v37 = vmax.f32 %v426_v11, 0.0 }
 0x1d7   :  { %v807_v60 = vadd.f32 %v2688_v49, %v806_v35  ;;  %v1002_v36 = vadd.f32 %v2688_v49, %v1001_v34  ;;  %v431_v5 = vpop.f32.mrf.mxu0  ;;  %v623_v48 = vpop.f32.mrf.mxu1  ;;  %v1183_v35 = vmax.f32 %v618_v22, 0.0  ;;  %v429_v22 = vadd.f32 %v2688_v49, %v428_v62 }
 0x1d8   :  { %v624_v61 = vadd.f32 %v2688_v49, %v623_v48  ;;  %v432_v15 = vadd.f32 %v2688_v49, %v431_v5 }
 0x1d9   :  { %v1246_v19 = vmax.f32 %v807_v60, 0.0  ;;  %v1311_v30 = vmax.f32 %v1002_v36, 0.0  ;;  %v1453_v60 = vadd.f32 %v1452_v43, %v1183_v35  ;;  %v141_v43 = vld [vmem:[%s3377_s0 + $0x3c0] sm:$0xff]  ;;  %v1120_v63 = vmax.f32 %v429_v22, 0.0 }
 0x1da   :  { %478 = vmatmul.f32.gmra.mxu0 %v76_v55  ;;  %670 = vmatmul.f32.gmra.mxu1 %v140_v40  ;;  %v1185_v36 = vmax.f32 %v624_v61, 0.0  ;;  %v1377_v40 = vadd.f32 %v1376_v13, %v1117_v23  ;;  %v1121_v0 = vmax.f32 %v432_v15, 0.0 }
 0x1db   :  { %v1526_v8 = vadd.f32 %v1525_v18, %v1246_v19  ;;  %v1601_v34 = vadd.f32 %v1600_v39, %v1311_v30  ;;  %856 = vmatmul.f32.gmra.mxu2 %v202_v57  ;;  %1051 = vmatmul.f32.gmra.mxu3 %v267_v7  ;;  %v1454_v62 = vadd.f32 %v1453_v60, %v1184_v42 }
 0x1dc   :  { %v1378_v57 = vadd.f32 %v1377_v40, %v1118_v56 }
 0x1dd   :  { %v1455_v19 = vadd.f32 %v1454_v62, %v1185_v36 }
 0x1de   :  { %v809_v48 = vpop.f32.mrf.mxu2  ;;  %v1004_v55 = vpop.f32.mrf.mxu3  ;;  %v1379_v61 = vadd.f32 %v1378_v57, %v1119_v37  ;;  %v1654_v57 = vld [vmem:[%s3380_s3 + $0x28] sm:$0xff] }
 0x1df   :  { %v810_v6 = vadd.f32 %v2688_v49, %v809_v48  ;;  %v1005_v18 = vadd.f32 %v2688_v49, %v1004_v55  ;;  %v434_v39 = vpop.f32.mrf.mxu0  ;;  %v626_v14 = vpop.f32.mrf.mxu1  ;;  %1702 = vmatpush.msrb.mxu1 %v1654_v57  ;;  %v271_v57 = vld [vmem:[%s3377_s0 + $0x7d0] sm:$0xff] }
 0x1e0   :  { %v627_v13 = vadd.f32 %v2688_v49, %v626_v14  ;;  %v435_v30 = vadd.f32 %v2688_v49, %v434_v39  ;;  %v1380_v11 = vadd.f32 %v1379_v61, %v1120_v63  ;;  %v204_v14 = vld [vmem:[%s3377_s0 + $0x5b8] sm:$0xff] }
 0x1e1   :  { %v1247_v7 = vmax.f32 %v810_v6, 0.0  ;;  %v1312_v52 = vmax.f32 %v1005_v18, 0.0 }
 0x1e2   :  { %v1186_v42 = vmax.f32 %v627_v13, 0.0  ;;  %481 = vmatmul.f32.gmra.mxu0 %v77_v41  ;;  %673 = vmatmul.f32.gmra.mxu1 %v141_v43  ;;  %v1122_v60 = vmax.f32 %v435_v30, 0.0  ;;  %v1381_v6 = vadd.f32 %v1380_v11, %v1121_v0  ;;  %v269_v41 = vld [vmem:[%s3377_s0 + $0x7c0] sm:$0xff] }
 0x1e3   :  { %v1527_v5 = vadd.f32 %v1526_v8, %v1247_v7  ;;  %v1602_v35 = vadd.f32 %v1601_v34, %v1312_v52  ;;  %859 = vmatmul.f32.gmra.mxu2 %v203_v38  ;;  %1054 = vmatmul.f32.gmra.mxu3 %v268_v26  ;;  %v78_v8 = vld [vmem:[%s3377_s0 + $0x1c8] sm:$0xff] }
 0x1e4   :  { %v1456_v23 = vadd.f32 %v1455_v19, %v1186_v42  ;;  %v142_v34 = vld [vmem:[%s3377_s0 + $0x3c8] sm:$0xff]  ;;  %v1382_v62 = vadd.f32 %v1381_v6, %v1122_v60  ;;  %v205_v60 = vld [vmem:[%s3377_s0 + $0x5c0] sm:$0xff] }
 0x1e6   :  { %v812_v48 = vpop.f32.mrf.mxu2  ;;  %v1007_v56 = vpop.f32.mrf.mxu3 }
 0x1e7   :  { %v813_v55 = vadd.f32 %v2688_v49, %v812_v48  ;;  %v1008_v22 = vadd.f32 %v2688_v49, %v1007_v56  ;;  %v437_v36 = vpop.f32.mrf.mxu0  ;;  %v629_v40 = vpop.f32.mrf.mxu1  ;;  %v270_v48 = vld [vmem:[%s3377_s0 + $0x7c8] sm:$0xff] }
 0x1e8   :  { %v438_v18 = vadd.f32 %v2688_v49, %v437_v36  ;;  %v630_v39 = vadd.f32 %v2688_v49, %v629_v40 }
 0x1e9   :  { %v1248_v43 = vmax.f32 %v813_v55, 0.0  ;;  %v1313_v37 = vmax.f32 %v1008_v22, 0.0 }
 0x1ea   :  { %v1123_v15 = vmax.f32 %v438_v18, 0.0  ;;  %v1187_v13 = vmax.f32 %v630_v39, 0.0  ;;  %484 = vmatmul.f32.gmra.mxu0 %v78_v8  ;;  %676 = vmatmul.f32.gmra.mxu1 %v142_v34 }
 0x1eb   :  { %v1528_v38 = vadd.f32 %v1527_v5, %v1248_v43  ;;  %v1603_v26 = vadd.f32 %v1602_v35, %v1313_v37  ;;  %862 = vmatmul.f32.gmra.mxu2 %v204_v14  ;;  %1057 = vmatmul.f32.gmra.mxu3 %v269_v41  ;;  %v79_v5 = vld [vmem:[%s3377_s0 + $0x1d0] sm:$0xff] }
 0x1ec   :  { %v1383_v7 = vadd.f32 %v1382_v62, %v1123_v15  ;;  %v1457_v52 = vadd.f32 %v1456_v23, %v1187_v13  ;;  %v143_v35 = vld [vmem:[%s3377_s0 + $0x3d0] sm:$0xff]  ;;  %v80_v62 = vld [vmem:[%s3377_s0 + $0x1d8] sm:$0xff] }
 0x1ed   :  { %v144_v15 = vld [vmem:[%s3377_s0 + $0x3d8] sm:$0xff] }
 0x1ee   :  { %v815_v63 = vpop.f32.mrf.mxu2  ;;  %v1010_v19 = vpop.f32.mrf.mxu3 }
 0x1ef   :  { %v816_v30 = vadd.f32 %v2688_v49, %v815_v63  ;;  %v1011_v42 = vadd.f32 %v2688_v49, %v1010_v19  ;;  %v440_v61 = vpop.f32.mrf.mxu0  ;;  %v632_v0 = vpop.f32.mrf.mxu1 }
 0x1f0   :  { %v441_v11 = vadd.f32 %v2688_v49, %v440_v61  ;;  %v633_v23 = vadd.f32 %v2688_v49, %v632_v0 }
 0x1f1   :  { %v1249_v56 = vmax.f32 %v816_v30, 0.0  ;;  %v1314_v55 = vmax.f32 %v1011_v42, 0.0 }
 0x1f2   :  { %v1124_v22 = vmax.f32 %v441_v11, 0.0  ;;  %v1188_v36 = vmax.f32 %v633_v23, 0.0  ;;  %487 = vmatmul.f32.gmra.mxu0 %v79_v5  ;;  %679 = vmatmul.f32.gmra.mxu1 %v143_v35 }
 0x1f3   :  { %v1529_v40 = vadd.f32 %v1528_v38, %v1249_v56  ;;  %v1604_v8 = vadd.f32 %v1603_v26, %v1314_v55  ;;  %865 = vmatmul.f32.gmra.mxu2 %v205_v60  ;;  %1060 = vmatmul.f32.gmra.mxu3 %v270_v48  ;;  %v206_v26 = vld [vmem:[%s3377_s0 + $0x5c8] sm:$0xff]  ;;  %v81_v56 = vld [vmem:[%s3377_s0 + $0x1e0] sm:$0xff] }
 0x1f4   :  { %v1384_v34 = vadd.f32 %v1383_v7, %v1124_v22  ;;  %v1458_v6 = vadd.f32 %v1457_v52, %v1188_v36  ;;  %v145_v55 = vld [vmem:[%s3377_s0 + $0x3e0] sm:$0xff] }
 0x1f6   :  { %v818_v18 = vpop.f32.mrf.mxu2  ;;  %v1013_v39 = vpop.f32.mrf.mxu3 }
 0x1f7   :  { %v819_v14 = vadd.f32 %v2688_v49, %v818_v18  ;;  %v1014_v41 = vadd.f32 %v2688_v49, %v1013_v39  ;;  %v443_v43 = vpop.f32.mrf.mxu0  ;;  %v635_v37 = vpop.f32.mrf.mxu1 }
 0x1f8   :  { %v444_v13 = vadd.f32 %v2688_v49, %v443_v43  ;;  %v636_v38 = vadd.f32 %v2688_v49, %v635_v37 }
 0x1f9   :  { %v1250_v7 = vmax.f32 %v819_v14, 0.0  ;;  %v1315_v52 = vmax.f32 %v1014_v41, 0.0 }
 0x1fa   :  { %v1125_v63 = vmax.f32 %v444_v13, 0.0  ;;  %v1189_v19 = vmax.f32 %v636_v38, 0.0  ;;  %490 = vmatmul.f32.gmra.mxu0 %v80_v62  ;;  %682 = vmatmul.f32.gmra.mxu1 %v144_v15  ;;  %v1653_v62 = vld [vmem:[%s3380_s3 + $0x20] sm:$0xff] }
 0x1fb   :  { %v1530_v30 = vadd.f32 %v1529_v40, %v1250_v7  ;;  %v1605_v42 = vadd.f32 %v1604_v8, %v1315_v52  ;;  %868 = vmatmul.f32.gmra.mxu2 %v206_v26  ;;  %1063 = vmatmul.f32.gmra.mxu3 %v271_v57  ;;  %v207_v40 = vld [vmem:[%s3377_s0 + $0x5d0] sm:$0xff]  ;;  %v272_v8 = vld [vmem:[%s3377_s0 + $0x7d8] sm:$0xff]  ;;  %v82_v52 = vld [vmem:[%s3377_s0 + $0x1e8] sm:$0xff] }
 0x1fc   :  { %v1385_v61 = vadd.f32 %v1384_v34, %v1125_v63  ;;  %v1459_v0 = vadd.f32 %v1458_v6, %v1189_v19  ;;  %1703 = vmatpush.msrb.mxu1 %v1653_v62  ;;  %v146_v63 = vld [vmem:[%s3377_s0 + $0x3e8] sm:$0xff] }
 0x1fe   :  { %v821_v5 = vpop.f32.mrf.mxu2  ;;  %v1016_v35 = vpop.f32.mrf.mxu3 }
 0x1ff   :  { %v822_v11 = vadd.f32 %v2688_v49, %v821_v5  ;;  %v1017_v23 = vadd.f32 %v2688_v49, %v1016_v35  ;;  %v446_v60 = vpop.f32.mrf.mxu0  ;;  %v638_v48 = vpop.f32.mrf.mxu1 }
 0x200   :  { %v447_v22 = vadd.f32 %v2688_v49, %v446_v60  ;;  %v639_v36 = vadd.f32 %v2688_v49, %v638_v48 }
 0x201   :  { %v1251_v34 = vmax.f32 %v822_v11, 0.0  ;;  %v1316_v6 = vmax.f32 %v1017_v23, 0.0 }
 0x202   :  { %v1126_v18 = vmax.f32 %v447_v22, 0.0  ;;  %v1190_v39 = vmax.f32 %v639_v36, 0.0  ;;  %493 = vmatmul.f32.gmra.mxu0 %v81_v56  ;;  %685 = vmatmul.f32.gmra.mxu1 %v145_v55 }
 0x203   :  { %v1531_v14 = vadd.f32 %v1530_v30, %v1251_v34  ;;  %v1606_v41 = vadd.f32 %v1605_v42, %v1316_v6  ;;  %871 = vmatmul.f32.gmra.mxu2 %v207_v40  ;;  %1066 = vmatmul.f32.gmra.mxu3 %v272_v8  ;;  %v208_v42 = vld [vmem:[%s3377_s0 + $0x5d8] sm:$0xff]  ;;  %v83_v6 = vld [vmem:[%s3377_s0 + $0x1f0] sm:$0xff] }
 0x204   :  { %v1386_v43 = vadd.f32 %v1385_v61, %v1126_v18  ;;  %v1460_v37 = vadd.f32 %v1459_v0, %v1190_v39  ;;  %v273_v61 = vld [vmem:[%s3377_s0 + $0x7e0] sm:$0xff] }
 0x206   :  { %v824_v15 = vpop.f32.mrf.mxu2  ;;  %v1019_v13 = vpop.f32.mrf.mxu3 }
 0x207   :  { %v825_v38 = vadd.f32 %v2688_v49, %v824_v15  ;;  %v1020_v26 = vadd.f32 %v2688_v49, %v1019_v13  ;;  %v449_v57 = vpop.f32.mrf.mxu0  ;;  %v641_v7 = vpop.f32.mrf.mxu1 }
 0x208   :  { %v450_v19 = vadd.f32 %v2688_v49, %v449_v57  ;;  %v642_v30 = vadd.f32 %v2688_v49, %v641_v7 }
 0x209   :  { %v1252_v0 = vmax.f32 %v825_v38, 0.0  ;;  %v1317_v5 = vmax.f32 %v1020_v26, 0.0 }
 0x20a   :  { %v1127_v35 = vmax.f32 %v450_v19, 0.0  ;;  %v1191_v11 = vmax.f32 %v642_v30, 0.0  ;;  %496 = vmatmul.f32.gmra.mxu0 %v82_v52  ;;  %688 = vmatmul.f32.gmra.mxu1 %v146_v63 }
 0x20b   :  { %v1532_v23 = vadd.f32 %v1531_v14, %v1252_v0  ;;  %v1607_v60 = vadd.f32 %v1606_v41, %v1317_v5  ;;  %874 = vmatmul.f32.gmra.mxu2 %v208_v42  ;;  %1069 = vmatmul.f32.gmra.mxu3 %v273_v61  ;;  %v209_v14 = vld [vmem:[%s3377_s0 + $0x5e0] sm:$0xff]  ;;  %v274_v41 = vld [vmem:[%s3377_s0 + $0x7e8] sm:$0xff]  ;;  %v84_v61 = vld [vmem:[%s3377_s0 + $0x1f8] sm:$0xff] }
 0x20c   :  { %v1387_v48 = vadd.f32 %v1386_v43, %v1127_v35  ;;  %v1461_v56 = vadd.f32 %v1460_v37, %v1191_v11  ;;  %v210_v35 = vld [vmem:[%s3377_s0 + $0x5e8] sm:$0xff]  ;;  %v275_v11 = vld [vmem:[%s3377_s0 + $0x7f0] sm:$0xff] }
 0x20e   :  { %v827_v55 = vpop.f32.mrf.mxu2  ;;  %v1022_v22 = vpop.f32.mrf.mxu3 }
 0x20f   :  { %v828_v36 = vadd.f32 %v2688_v49, %v827_v55  ;;  %v1023_v40 = vadd.f32 %v2688_v49, %v1022_v22  ;;  %v452_v8 = vpop.f32.mrf.mxu0  ;;  %v644_v34 = vpop.f32.mrf.mxu1 }
 0x210   :  { %v453_v18 = vadd.f32 %v2688_v49, %v452_v8  ;;  %v645_v39 = vadd.f32 %v2688_v49, %v644_v34 }
 0x211   :  { %v1253_v43 = vmax.f32 %v828_v36, 0.0  ;;  %v1318_v37 = vmax.f32 %v1023_v40, 0.0 }
 0x212   :  { %v1128_v62 = vmax.f32 %v453_v18, 0.0  ;;  %v1192_v15 = vmax.f32 %v645_v39, 0.0  ;;  %499 = vmatmul.f32.gmra.mxu0 %v83_v6 }
 0x213   :  { %v1533_v13 = vadd.f32 %v1532_v23, %v1253_v43  ;;  %v1608_v38 = vadd.f32 %v1607_v60, %v1318_v37  ;;  %877 = vmatmul.f32.gmra.mxu2 %v209_v14  ;;  %1072 = vmatmul.f32.gmra.mxu3 %v274_v41  ;;  %v211_v37 = vld [vmem:[%s3377_s0 + $0x5f0] sm:$0xff] }
 0x214   :  { %v1388_v26 = vadd.f32 %v1387_v48, %v1128_v62  ;;  %v1462_v57 = vadd.f32 %v1461_v56, %v1192_v15  ;;  %v276_v62 = vld [vmem:[%s3377_s0 + $0x7f8] sm:$0xff] }
 0x216   :  { %v830_v7 = vpop.f32.mrf.mxu2  ;;  %v1025_v52 = vpop.f32.mrf.mxu3 }
 0x217   :  { %v831_v63 = vadd.f32 %v2688_v49, %v830_v7  ;;  %v1026_v19 = vadd.f32 %v2688_v49, %v1025_v52  ;;  %v455_v30 = vpop.f32.mrf.mxu0  ;;  %v647_v42 = vpop.f32.mrf.mxu1 }
 0x218   :  { %v456_v0 = vadd.f32 %v2688_v49, %v455_v30  ;;  %v648_v5 = vadd.f32 %v2688_v49, %v647_v42 }
 0x219   :  { %v1254_v23 = vmax.f32 %v831_v63, 0.0  ;;  %v1319_v60 = vmax.f32 %v1026_v19, 0.0  ;;  %v1652_v19 = vld [vmem:[%s3380_s3 + $0x18] sm:$0xff] }
 0x21a   :  { %v1129_v48 = vmax.f32 %v456_v0, 0.0  ;;  %v1193_v56 = vmax.f32 %v648_v5, 0.0  ;;  %502 = vmatmul.f32.gmra.mxu0 %v84_v61  ;;  %1704 = vmatpush.msrb.mxu1 %v1652_v19 }
 0x21b   :  { %v1534_v55 = vadd.f32 %v1533_v13, %v1254_v23  ;;  %v1609_v22 = vadd.f32 %v1608_v38, %v1319_v60  ;;  %880 = vmatmul.f32.gmra.mxu2 %v210_v35  ;;  %1075 = vmatmul.f32.gmra.mxu3 %v275_v11 }
 0x21c   :  { %v1389_v36 = vadd.f32 %v1388_v26, %v1129_v48  ;;  %v1463_v40 = vadd.f32 %v1462_v57, %v1193_v56 }
 0x21e   :  { %v833_v8 = vpop.f32.mrf.mxu2  ;;  %v1028_v34 = vpop.f32.mrf.mxu3 }
 0x21f   :  { %v834_v6 = vadd.f32 %v2688_v49, %v833_v8  ;;  %v1029_v18 = vadd.f32 %v2688_v49, %v1028_v34  ;;  %v458_v39 = vpop.f32.mrf.mxu0  ;;  %v650_v14 = vpop.f32.mrf.mxu1 }
 0x220   :  { %v459_v41 = vadd.f32 %v2688_v49, %v458_v39  ;;  %v651_v43 = vadd.f32 %v2688_v49, %v650_v14 }
 0x221   :  { %v1255_v15 = vmax.f32 %v834_v6, 0.0  ;;  %v1320_v13 = vmax.f32 %v1029_v18, 0.0 }
 0x222   :  { %v1130_v38 = vmax.f32 %v459_v41, 0.0  ;;  %v1194_v26 = vmax.f32 %v651_v43, 0.0 }
 0x223   :  { %v1535_v57 = vadd.f32 %v1534_v55, %v1255_v15  ;;  %v1610_v7 = vadd.f32 %v1609_v22, %v1320_v13  ;;  %883 = vmatmul.f32.gmra.mxu2 %v211_v37  ;;  %1078 = vmatmul.f32.gmra.mxu3 %v276_v62  ;;  %v507_v62 = vadd.f32 %v2688_v49, %v2102_v17 }
 0x224   :  { %v1390_v52 = vadd.f32 %v1389_v36, %v1130_v38  ;;  %v1464_v63 = vadd.f32 %v1463_v40, %v1194_v26  ;;  %v510_v15 = vadd.f32 %v2688_v49, %v2122_v25 }
 0x226   :  { %v836_v30 = vpop.f32.mrf.mxu2  ;;  %v1031_v42 = vpop.f32.mrf.mxu3 }
 0x227   :  { %v837_v61 = vadd.f32 %v2688_v49, %v836_v30  ;;  %v1032_v0 = vadd.f32 %v2688_v49, %v1031_v42  ;;  %v461_v5 = vpop.f32.mrf.mxu0  ;;  %v653_v35 = vpop.f32.mrf.mxu1  ;;  %v1146_v30 = vmax.f32 %v507_v62, 0.0  ;;  %v1147_v42 = vmax.f32 %v510_v15, 0.0 }
 0x228   :  { %v462_v11 = vadd.f32 %v2688_v49, %v461_v5  ;;  %v654_v23 = vadd.f32 %v2688_v49, %v653_v35 }
 0x229   :  { %v1256_v60 = vmax.f32 %v837_v61, 0.0  ;;  %v1321_v48 = vmax.f32 %v1032_v0, 0.0  ;;  %v513_v61 = vadd.f32 %v2688_v49, %v2140_v33 }
 0x22a   :  { %v1131_v56 = vmax.f32 %v462_v11, 0.0  ;;  %v1195_v55 = vmax.f32 %v654_v23, 0.0  ;;  %v315_v23 = vadd.f32 %v2688_v49, %v2100_v16 }
 0x22b   :  { %v1536_v22 = vadd.f32 %v1535_v57, %v1256_v60  ;;  %v1611_v36 = vadd.f32 %v1610_v7, %v1321_v48  ;;  %v318_v60 = vadd.f32 %v2688_v49, %v2120_v24  ;;  %v324_v24 = vadd.f32 %v2688_v49, %v2164_v44 }
 0x22c   :  { %v1391_v40 = vadd.f32 %v1390_v52, %v1131_v56  ;;  %v1465_v8 = vadd.f32 %v1464_v63, %v1195_v55  ;;  %v1412_v56 = vadd.f32 %v1147_v42, %v1146_v30 }
 0x22d   :  { %v1083_v16 = vmax.f32 %v318_v60, 0.0  ;;  %v525_v60 = vadd.f32 %v2688_v49, %v2221_v31 }
 0x22e   :  { %v839_v34 = vpop.f32.mrf.mxu2  ;;  %v1034_v6 = vpop.f32.mrf.mxu3 }
 0x22f   :  { %v840_v18 = vadd.f32 %v2688_v49, %v839_v34  ;;  %v1035_v39 = vadd.f32 %v2688_v49, %v1034_v6  ;;  %v464_v14 = vpop.f32.mrf.mxu0  ;;  %v656_v41 = vpop.f32.mrf.mxu1 }
 0x230   :  { %v465_v43 = vadd.f32 %v2688_v49, %v464_v14  ;;  %v657_v37 = vadd.f32 %v2688_v49, %v656_v41 }
 0x231   :  { %v1257_v13 = vmax.f32 %v840_v18, 0.0  ;;  %v1322_v38 = vmax.f32 %v1035_v39, 0.0  ;;  %v1082_v18 = vmax.f32 %v315_v23, 0.0 }
 0x232   :  { %v1132_v26 = vmax.f32 %v465_v43, 0.0  ;;  %v1196_v57 = vmax.f32 %v657_v37, 0.0  ;;  %v327_v37 = vadd.f32 %v2688_v49, %v2183_v58  ;;  %v522_v58 = vadd.f32 %v2688_v49, %v2203_v10  ;;  %v1651_v10 = vld [vmem:[%s3380_s3 + $0x10] sm:$0xff] }
 0x233   :  { %v1537_v7 = vadd.f32 %v1536_v22, %v1257_v13  ;;  %v1612_v52 = vadd.f32 %v1611_v36, %v1322_v38  ;;  %v321_v22 = vadd.f32 %v2688_v49, %v2138_v32  ;;  %v1148_v36 = vmax.f32 %v513_v61, 0.0  ;;  %1705 = vmatpush.msrb.mxu1 %v1651_v10 }
 0x234   :  { %v1392_v63 = vadd.f32 %v1391_v40, %v1132_v26  ;;  %v3035_v19 = vadd.f32 %v1465_v8, %v1196_v57  ;;  %v516_v40 = vadd.f32 %v2688_v49, %v2166_v45  ;;  %v519_v45 = vadd.f32 %v2688_v49, %v2185_v59 }
 0x235   :  { %v1084_v14 = vmax.f32 %v321_v22, 0.0  ;;  %v1413_v41 = vadd.f32 %v1412_v56, %v1148_v36  ;;  %v1338_v44 = vadd.f32 %v1083_v16, %v1082_v18  ;;  %v1085_v57 = vmax.f32 %v324_v24, 0.0 }
 0x236   :  { %v842_v0 = vpop.f32.mrf.mxu2  ;;  %v1037_v5 = vpop.f32.mrf.mxu3  ;;  %v1149_v43 = vmax.f32 %v516_v40, 0.0  ;;  %v1086_v61 = vmax.f32 %v327_v37, 0.0  ;;  %v1151_v56 = vmax.f32 %v522_v58, 0.0  ;;  %v1152_v16 = vmax.f32 %v525_v60, 0.0 }
 0x237   :  { %v843_v17 = vadd.f32 %v2688_v49, %v842_v0  ;;  %v1038_v25 = vadd.f32 %v2688_v49, %v1037_v5  ;;  %v467_v35 = vpop.f32.mrf.mxu0  ;;  %v3041_v11 = vpop.f32.mrf.mxu1  ;;  %v1339_v59 = vadd.f32 %v1338_v44, %v1084_v14  ;;  %v1150_v5 = vmax.f32 %v519_v45, 0.0 }
 0x238   :  { %v468_v48 = vadd.f32 %v2688_v49, %v467_v35  ;;  %v1414_v42 = vadd.f32 %v1413_v41, %v1149_v43 }
 0x239   :  { %v1258_v55 = vmax.f32 %v843_v17, 0.0  ;;  %v1323_v33 = vmax.f32 %v1038_v25, 0.0  ;;  %v333_v17 = vadd.f32 %v2688_v49, %v2219_v29  ;;  %v1340_v23 = vadd.f32 %v1339_v59, %v1085_v57  ;;  %v3079_v29 = vld [vmem:[%s3379_s2] ss:$0 sm:$0xff] }
 0x23a   :  { %v1133_v8 = vmax.f32 %v468_v48, 0.0  ;;  %v528_v31 = vadd.f32 %v3079_v29, %v2242_v51  ;;  %v1415_v36 = vadd.f32 %v1414_v42, %v1150_v5  ;;  %v339_v24 = vadd.f32 %v3079_v29, %v2258_v2 }
 0x23b   :  { %v1538_v34 = vadd.f32 %v1537_v7, %v1258_v55  ;;  %v1613_v6 = vadd.f32 %v1612_v52, %v1323_v33  ;;  %v330_v52 = vadd.f32 %v2688_v49, %v2201_v9  ;;  %v1341_v55 = vadd.f32 %v1340_v23, %v1086_v61 }
 0x23c   :  { %v1393_v39 = vadd.f32 %v1392_v63, %v1133_v8  ;;  %v336_v33 = vadd.f32 %v3079_v29, %v2240_v50  ;;  %v1088_v40 = vmax.f32 %v333_v17, 0.0  ;;  %v531_v50 = vadd.f32 %v3079_v29, %v2260_v3 }
 0x23d   :  { %v1087_v48 = vmax.f32 %v330_v52, 0.0  ;;  %v1153_v37 = vmax.f32 %v528_v31, 0.0  ;;  %v1090_v2 = vmax.f32 %v339_v24, 0.0  ;;  %v345_v3 = vadd.f32 %v3079_v29, %v2294_v46 }
 0x23e   :  { %v845_v32 = vpop.f32.mrf.mxu2  ;;  %v1040_v62 = vpop.f32.mrf.mxu3  ;;  %v1089_v43 = vmax.f32 %v336_v33, 0.0  ;;  %v1154_v44 = vmax.f32 %v531_v50, 0.0  ;;  %v537_v57 = vadd.f32 %v3079_v29, %v2296_v47  ;;  %v540_v59 = vadd.f32 %v3079_v29, %v2317_v4 }
 0x23f   :  { %v846_v15 = vadd.f32 %v2688_v49, %v845_v32  ;;  %v1041_v13 = vadd.f32 %v2688_v49, %v1040_v62  ;;  %v470_v38 = vpop.f32.mrf.mxu0  ;;  %v3060_v26 = vpop.f32.mrf.mxu1  ;;  %v1342_v51 = vadd.f32 %v1341_v55, %v1087_v48  ;;  %v342_v32 = vadd.f32 %v3079_v29, %v2276_v20 }
 0x240   :  { %v471_v7 = vadd.f32 %v2688_v49, %v470_v38  ;;  %v534_v62 = vadd.f32 %v3079_v29, %v2278_v21  ;;  %v348_v21 = vadd.f32 %v3079_v29, %v2315_v1  ;;  %v1092_v17 = vmax.f32 %v345_v3, 0.0 }
 0x241   :  { %v1259_v63 = vmax.f32 %v846_v15, 0.0  ;;  %v1324_v30 = vmax.f32 %v1041_v13, 0.0  ;;  %v1343_v45 = vadd.f32 %v1342_v51, %v1088_v40  ;;  %v1091_v58 = vmax.f32 %v342_v32, 0.0 }
 0x242   :  { %v1134_v0 = vmax.f32 %v471_v7, 0.0  ;;  %v543_v4 = vadd.f32 %v3079_v29, %v2335_v28  ;;  %v1093_v48 = vmax.f32 %v348_v21, 0.0  ;;  %v354_v31 = vadd.f32 %v3079_v29, %v2351_v53  ;;  %v3425_v28 = vld [vmem:[#allocation8_spill] sm:$0xff] }
 0x243   :  { %v1539_v25 = vadd.f32 %v1538_v34, %v1259_v63  ;;  %v1614_v35 = vadd.f32 %v1613_v6, %v1324_v30  ;;  %v1344_v7 = vadd.f32 %v1343_v45, %v1089_v43  ;;  %v1155_v63 = vmax.f32 %v534_v62, 0.0 }
 0x244   :  { %v3071_v9 = vadd.f32 %v1393_v39, %v1134_v0  ;;  %v1416_v39 = vadd.f32 %v1415_v36, %v1151_v56  ;;  %v1157_v56 = vmax.f32 %v540_v59, 0.0  ;;  %v1158_v40 = vmax.f32 %v543_v4, 0.0 }
 0x245   :  { %v1345_v47 = vadd.f32 %v1344_v7, %v1090_v2  ;;  %v3429_v2 = vld [vmem:[#allocation12_spill] sm:$0xff] }
 0x246   :  { %v848_v49 = vpop.f32.mrf.mxu2  ;;  %v1043_v22 = vpop.f32.mrf.mxu3  ;;  %v1417_v38 = vadd.f32 %v1416_v39, %v1152_v16 }
 0x247   :  { %v849_v8 = vadd.f32 %v3079_v29, %v848_v49  ;;  %v1044_v34 = vadd.f32 %v3079_v29, %v1043_v22  ;;  %v3087_v6 = vpop.f32.mrf.mxu0  ;;  %v3089_v18 = vpop.f32.mrf.mxu1  ;;  %v1346_v60 = vadd.f32 %v1345_v47, %v1091_v58  ;;  %v546_v49 = vadd.f32 %v3079_v29, %v2353_v54  ;;  %v3430_v58 = vld [vmem:[#allocation13_spill] sm:$0xff] }
 0x248   :  { %v1418_v52 = vadd.f32 %v1417_v38, %v1153_v37  ;;  %v1095_v54 = vmax.f32 %v354_v31, 0.0  ;;  %v3427_v37 = vld [vmem:[#allocation10_spill] sm:$0xff]  ;;  %v3434_v31 = vld [vmem:[#allocation17_spill] sm:$0xff] }
 0x249   :  { %v1260_v14 = vmax.f32 %v849_v8, 0.0  ;;  %v1325_v41 = vmax.f32 %v1044_v34, 0.0  ;;  %v357_v8 = vadd.f32 %v3079_v29, %v2372_v12  ;;  %v549_v34 = vadd.f32 %v3079_v29, %v3425_v28 }
 0x24a   :  { %v1419_v5 = vadd.f32 %v1418_v52, %v1154_v44  ;;  %v552_v12 = vadd.f32 %v3079_v29, %v3427_v37  ;;  %v555_v44 = vadd.f32 %v3079_v29, %v3429_v2 }
 0x24b   :  { %v1540_v15 = vadd.f32 %v1539_v25, %v1260_v14  ;;  %v1615_v13 = vadd.f32 %v1614_v35, %v1325_v41  ;;  %v1156_v25 = vmax.f32 %v537_v57, 0.0  ;;  %v351_v35 = vadd.f32 %v3079_v29, %v2333_v27  ;;  %v3426_v41 = vld [vmem:[#allocation9_spill] sm:$0xff] }
 0x24c   :  { %v1420_v10 = vadd.f32 %v1419_v5, %v1155_v63  ;;  %v1347_v27 = vadd.f32 %v1346_v60, %v1092_v17  ;;  %v1159_v14 = vmax.f32 %v546_v49, 0.0  ;;  %v360_v43 = vadd.f32 %v3079_v29, %v3426_v41  ;;  %v3432_v17 = vld [vmem:[#allocation15_spill] sm:$0xff] }
 0x24d   :  { %v1094_v36 = vmax.f32 %v351_v35, 0.0  ;;  %v1096_v45 = vmax.f32 %v357_v8, 0.0  ;;  %v1161_v52 = vmax.f32 %v552_v12, 0.0  ;;  %v366_v63 = vadd.f32 %v3079_v29, %v3430_v58  ;;  %v3433_v35 = vld [vmem:[#allocation16_spill] sm:$0xff]  ;;  %v3440_v58 = vld [vmem:[#allocation23_spill] sm:$0xff] }
 0x24e   :  { %v851_v20 = vpop.f32.mrf.mxu2  ;;  %v1046_v30 = vpop.f32.mrf.mxu3  ;;  %v1421_v22 = vadd.f32 %v1420_v10, %v1156_v25  ;;  %v1348_v50 = vadd.f32 %v1347_v27, %v1093_v48  ;;  %v1097_v7 = vmax.f32 %v360_v43, 0.0  ;;  %v1162_v5 = vmax.f32 %v555_v44, 0.0  ;;  %v3435_v27 = vld [vmem:[#allocation18_spill] sm:$0xff] }
 0x24f   :  { %v852_v42 = vadd.f32 %v3079_v29, %v851_v20  ;;  %v1047_v61 = vadd.f32 %v3079_v29, %v1046_v30  ;;  %v3109_v46 = vpop.f32.mrf.mxu0  ;;  %v3111_v0 = vpop.f32.mrf.mxu1  ;;  %v3431_v20 = vld [vmem:[#allocation14_spill] sm:$0xff]  ;;  %v369_v25 = vadd.f32 %v3079_v29, %v3432_v17  ;;  %v1099_v48 = vmax.f32 %v366_v63, 0.0  ;;  %v3442_v17 = vld [vmem:[#allocation25_spill] sm:$0xff] }
 0x250   :  { %v1422_v51 = vadd.f32 %v1421_v22, %v1157_v56  ;;  %v1349_v32 = vadd.f32 %v1348_v50, %v1094_v36  ;;  %v558_v30 = vadd.f32 %v3079_v29, %v3431_v20  ;;  %v372_v49 = vadd.f32 %v3079_v29, %v3434_v31  ;;  %v3441_v20 = vld [vmem:[#allocation24_spill] sm:$0xff]  ;;  %v3444_v31 = vld [vmem:[#allocation27_spill] sm:$0xff] }
 0x251   :  { %v1261_v23 = vmax.f32 %v852_v42, 0.0  ;;  %v1326_v1 = vmax.f32 %v1047_v61, 0.0  ;;  %v564_v22 = vadd.f32 %v3079_v29, %v3435_v27  ;;  %v1100_v8 = vmax.f32 %v369_v25, 0.0  ;;  %v3445_v27 = vld [vmem:[#allocation28_spill] sm:$0xff] }
 0x252   :  { %v1423_v62 = vadd.f32 %v1422_v51, %v1158_v40  ;;  %v1350_v3 = vadd.f32 %v1349_v32, %v1095_v54  ;;  %v1163_v56 = vmax.f32 %v558_v30, 0.0  ;;  %v3437_v51 = vld [vmem:[#allocation20_spill] sm:$0xff]  ;;  %v1101_v37 = vmax.f32 %v372_v49, 0.0  ;;  %v3438_v32 = vld [vmem:[#allocation21_spill] sm:$0xff] }
 0x253   :  { %v3117_v55 = vadd.f32 %v1540_v15, %v1261_v23  ;;  %v3119_v33 = vadd.f32 %v1615_v13, %v1326_v1  ;;  %v1160_v15 = vmax.f32 %v549_v34, 0.0  ;;  %v3428_v13 = vld [vmem:[#allocation11_spill] sm:$0xff]  ;;  %v561_v23 = vadd.f32 %v3079_v29, %v3433_v35  ;;  %v3443_v35 = vld [vmem:[#allocation26_spill] sm:$0xff] }
 0x254   :  { %v363_v38 = vadd.f32 %v3079_v29, %v3428_v13  ;;  %v1424_v57 = vadd.f32 %v1423_v62, %v1159_v14  ;;  %v1351_v21 = vadd.f32 %v1350_v3, %v1096_v45  ;;  %v3436_v34 = vld [vmem:[#allocation19_spill] sm:$0xff]  ;;  %v567_v54 = vadd.f32 %v3079_v29, %v3437_v51  ;;  %v1650_v14 = vld [vmem:[%s3380_s3 + $0x8] sm:$0xff]  ;;  %v3439_v45 = vld [vmem:[#allocation22_spill] sm:$0xff] }
 0x255   :  { %v1164_v28 = vmax.f32 %v561_v23, 0.0  ;;  %v375_v50 = vadd.f32 %v3079_v29, %v3436_v34  ;;  %v1165_v12 = vmax.f32 %v564_v22, 0.0  ;;  %1706 = vmatpush.msrb.mxu1 %v1650_v14  ;;  %v378_v62 = vadd.f32 %v3079_v29, %v3438_v32  ;;  %v3446_v51 = vld [vmem:[#allocation29_spill] sm:$0xff]  ;;  %v3447_v14 = vld [vmem:[#allocation30_spill] sm:$0xff] }
 0x256   :  { %v3129_v16 = vpop.f32.mrf.mxu2  ;;  %v3131_v24 = vpop.f32.mrf.mxu3  ;;  %v1425_v59 = vadd.f32 %v1424_v57, %v1160_v15  ;;  %v1098_v42 = vmax.f32 %v363_v38, 0.0  ;;  %v1352_v10 = vadd.f32 %v1351_v21, %v1097_v7  ;;  %v570_v15 = vadd.f32 %v3079_v29, %v3439_v45 }
 0x257   :  { %v3133_v53 = vpop.f32.mrf.mxu0  ;;  %v3135_v39 = vpop.f32.mrf.mxu1  ;;  %v1102_v3 = vmax.f32 %v375_v50, 0.0  ;;  %v381_v63 = vadd.f32 %v3079_v29, %v3440_v58  ;;  %v573_v30 = vadd.f32 %v3079_v29, %v3441_v20  ;;  %v384_v25 = vadd.f32 %v3079_v29, %v3442_v17 }
 0x258   :  { %v1426_v4 = vadd.f32 %v1425_v59, %v1161_v52  ;;  %v1353_v36 = vadd.f32 %v1352_v10, %v1098_v42  ;;  %v1166_v52 = vmax.f32 %v567_v54, 0.0  ;;  %v1103_v42 = vmax.f32 %v378_v62, 0.0 }
 0x259   :  { %v576_v23 = vadd.f32 %v3079_v29, %v3443_v35  ;;  %v387_v49 = vadd.f32 %v3079_v29, %v3444_v31  ;;  %v579_v22 = vadd.f32 %v3079_v29, %v3445_v27  ;;  %v390_v54 = vadd.f32 %v3079_v29, %v3446_v51 }
 0x25a   :  { %v1427_v40 = vadd.f32 %v1426_v4, %v1162_v5  ;;  %v1354_v41 = vadd.f32 %v1353_v36, %v1099_v48  ;;  %v1167_v5 = vmax.f32 %v570_v15, 0.0  ;;  %v1104_v48 = vmax.f32 %v381_v63, 0.0 }
 0x25b   :  { %v1106_v62 = vmax.f32 %v387_v49, 0.0  ;;  %v660_v45 = vadd.f32 %v3079_v29, %v3041_v11  ;;  %v1170_v15 = vmax.f32 %v579_v22, 0.0  ;;  %v663_v20 = vadd.f32 %v3079_v29, %v3060_v26 }
 0x25c   :  { %v1428_v43 = vadd.f32 %v1427_v40, %v1163_v56  ;;  %v1355_v2 = vadd.f32 %v1354_v41, %v1100_v8  ;;  %v1168_v56 = vmax.f32 %v573_v30, 0.0  ;;  %v1105_v8 = vmax.f32 %v384_v25, 0.0 }
 0x25d   :  { %v582_v41 = vadd.f32 %v3079_v29, %v3447_v14  ;;  %v1107_v30 = vmax.f32 %v390_v54, 0.0  ;;  %v1828_v17 = vmov 256.0   ;;  %v1197_v25 = vmax.f32 %v660_v45, 0.0  ;;  %v3453_v54 = vld [vmem:[#allocation36_spill] sm:$0xff]  ;;  %v3454_v45 = vld [vmem:[#allocation37_spill] sm:$0xff] }
 0x25e   :  { %v3149_v61 = vpop.f32.mrf.mxu2  ;;  %v3151_v47 = vpop.f32.mrf.mxu3  ;;  %v1429_v44 = vadd.f32 %v1428_v43, %v1164_v28  ;;  %v1356_v21 = vadd.f32 %v1355_v2, %v1101_v37  ;;  %v1169_v28 = vmax.f32 %v576_v23, 0.0  ;;  %v3448_v2 = vld [vmem:[#allocation31_spill] sm:$0xff]  ;;  %1796 = vrcp.f32 %v1828_v17 }
 0x25f   :  { %v3157_v1 = vpop.f32.mrf.mxu0  ;;  %v3159_v60 = vpop.f32.mrf.mxu1  ;;  %v666_v35 = vadd.f32 %v3079_v29, %v3089_v18  ;;  %v1198_v31 = vmax.f32 %v663_v20, 0.0  ;;  %v669_v49 = vadd.f32 %v3079_v29, %v3111_v0  ;;  %v591_v14 = vadd.f32 %v3079_v29, %v3453_v54 }
 0x260   :  { %v1430_v59 = vadd.f32 %v1429_v44, %v1165_v12  ;;  %v1357_v10 = vadd.f32 %v1356_v21, %v1102_v3  ;;  %v393_v44 = vadd.f32 %v3079_v29, %v3448_v2  ;;  %v3449_v3 = vld [vmem:[#allocation32_spill] sm:$0xff]  ;;  %v1171_v21 = vmax.f32 %v582_v41, 0.0 }
 0x261   :  { %v1467_v41 = vadd.f32 %v3035_v19, %v1197_v25  ;;  %v672_v0 = vadd.f32 %v3079_v29, %v3135_v39  ;;  %v3455_v19 = vld [vmem:[#allocation38_spill] sm:$0xff]  ;;  %v3457_v25 = vld [vmem:[#allocation40_spill] sm:$0xff] }
 0x262   :  { %v1431_v4 = vadd.f32 %v1430_v59, %v1166_v52  ;;  %v1358_v36 = vadd.f32 %v1357_v10, %v1103_v42  ;;  %v585_v52 = vadd.f32 %v3079_v29, %v3449_v3  ;;  %v3450_v59 = vld [vmem:[#allocation33_spill] sm:$0xff] }
 0x263   :  { %v396_v42 = vadd.f32 %v3079_v29, %v3450_v59  ;;  %v1468_v3 = vadd.f32 %v1467_v41, %v1198_v31  ;;  %v1174_v59 = vmax.f32 %v591_v14, 0.0 }
 0x264   :  { %v1432_v40 = vadd.f32 %v1431_v4, %v1167_v5  ;;  %v1359_v12 = vadd.f32 %v1358_v36, %v1104_v48  ;;  %v3451_v5 = vld [vmem:[#allocation34_spill] sm:$0xff]  ;;  %v1108_v4 = vmax.f32 %v393_v44, 0.0  ;;  %v1172_v48 = vmax.f32 %v585_v52, 0.0  ;;  %v3237_v2 = vpop.eup %1796 }
 0x265   :  { %v588_v11 = vadd.f32 %v3079_v29, %v3451_v5  ;;  %v1200_v52 = vmax.f32 %v669_v49, 0.0  ;;  %v1201_v5 = vmax.f32 %v672_v0, 0.0  ;;  %vm1639_vm0 = vweird.f32 %v3237_v2 }
 0x266   :  { %v3176_v13 = vpop.f32.mrf.mxu2  ;;  %v3178_v38 = vpop.f32.mrf.mxu3  ;;  %v1433_v32 = vadd.f32 %v1432_v40, %v1168_v56  ;;  %v1360_v58 = vadd.f32 %v1359_v12, %v1105_v8  ;;  %v3452_v56 = vld [vmem:[#allocation35_spill] sm:$0xff]  ;;  %v1109_v8 = vmax.f32 %v396_v42, 0.0  ;;  %v1199_v12 = vmax.f32 %v666_v35, 0.0 }
 0x267   :  { %v3180_v57 = vpop.f32.mrf.mxu0  ;;  %v3182_v7 = vpop.f32.mrf.mxu1  ;;  %v399_v26 = vadd.f32 %v3079_v29, %v3452_v56  ;;  %v597_v35 = vadd.f32 %v3079_v29, %v3457_v25 }
 0x268   :  { %v1434_v63 = vadd.f32 %v1433_v32, %v1169_v28  ;;  %v1361_v23 = vadd.f32 %v1360_v58, %v1106_v62  ;;  %v1173_v28 = vmax.f32 %v588_v11, 0.0  ;;  %v675_v58 = vadd.f32 %v3079_v29, %v3159_v60 }
 0x269   :  { %v1110_v44 = vmax.f32 %v399_v26, 0.0  ;;  %v1469_v42 = vadd.f32 %v1468_v3, %v1199_v12  ;;  %v678_v11 = vadd.f32 %v3079_v29, %v3182_v7 }
 0x26a   :  { %v1435_v10 = vadd.f32 %v1434_v63, %v1170_v15  ;;  %v1362_v36 = vadd.f32 %v1361_v23, %v1107_v30  ;;  %v402_v15 = vadd.f32 %v3079_v29, %v3454_v45  ;;  %v594_v30 = vadd.f32 %v3079_v29, %v3455_v19  ;;  %v3458_v23 = vld [vmem:[#allocation41_spill] sm:$0xff] }
 0x26b   :  { %v408_v60 = vadd.f32 %v3079_v29, %v3458_v23  ;;  %v1202_v56 = vmax.f32 %v675_v58, 0.0  ;;  %v1203_v0 = vmax.f32 %v678_v11, 0.0 }
 0x26c   :  { %v1436_v40 = vadd.f32 %v1435_v10, %v1171_v21  ;;  %v1363_v32 = vadd.f32 %v1362_v36, %v1108_v4  ;;  %v3456_v21 = vld [vmem:[#allocation39_spill] sm:$0xff]  ;;  %v1111_v17 = vmax.f32 %v402_v15, 0.0  ;;  %v1635_v10 = vmul.f32 256.0, %v3237_v2 }
 0x26d   :  { %v405_v39 = vadd.f32 %v3079_v29, %v3456_v21  ;;  %v1175_v36 = vmax.f32 %v594_v30, 0.0  ;;  %v1113_v45 = vmax.f32 %v408_v60, 0.0  ;;  %v477_v15 = vadd.f32 %v3079_v29, %v3109_v46  ;;  %v3461_v60 = vld [vmem:[#allocation7_spill] sm:$0xff] }
 0x26e   :  { %v3196_v34 = vpop.f32.mrf.mxu2  ;;  %v3198_v50 = vpop.f32.mrf.mxu3  ;;  %v1437_v62 = vadd.f32 %v1436_v40, %v1172_v48  ;;  %v1364_v63 = vadd.f32 %v1363_v32, %v1109_v8  ;;  %v1470_v48 = vadd.f32 %v1469_v42, %v1200_v52  ;;  %v3459_v40 = vld [vmem:[#allocation42_spill] sm:$0xff]  ;;  %v483_v46 = vadd.f32 %v3079_v29, %v3157_v1 }
 0x26f   :  { %v3204_v43 = vpop.f32.mrf.mxu0  ;;  %v680_v37 = vpop.f32.mrf.mxu1  ;;  %v1112_v7 = vmax.f32 %v405_v39, 0.0  ;;  %v600_v8 = vadd.f32 %v3079_v29, %v3459_v40  ;;  %v1136_v42 = vmax.f32 %v477_v15, 0.0  ;;  %v486_v1 = vadd.f32 %v3079_v29, %v3180_v57  ;;  %v3462_v40 = vld [vmem:[#allocation6_spill] sm:$0xff] }
 0x270   :  { %v1438_v20 = vadd.f32 %v1437_v62, %v1173_v28  ;;  %v1365_v4 = vadd.f32 %v1364_v63, %v1110_v44  ;;  %v681_v26 = vadd.f32 %v3079_v29, %v680_v37  ;;  %v474_v28 = vadd.f32 %v3079_v29, %v3087_v6 }
 0x271   :  { %v1471_v12 = vadd.f32 %v1470_v48, %v1201_v5  ;;  %v1176_v62 = vmax.f32 %v597_v35, 0.0  ;;  %v1177_v63 = vmax.f32 %v600_v8, 0.0  ;;  %v3460_v35 = vld [vmem:[#allocation5_spill] sm:$0xff]  ;;  %v3285_v8 = vadd.f32 %v3079_v29, %v3462_v40 }
 0x272   :  { %v1439_v41 = vadd.f32 %v1438_v20, %v1174_v59  ;;  %v1366_v32 = vadd.f32 %v1365_v4, %v1111_v17  ;;  %v1204_v3 = vmax.f32 %v681_v26, 0.0  ;;  %v1135_v19 = vmax.f32 %v474_v28, 0.0 }
 0x273   :  { %v1472_v44 = vadd.f32 %v1471_v12, %v1202_v56  ;;  %v480_v20 = vadd.f32 %v3079_v29, %v3133_v53  ;;  %v1636_v59 = vsub.f32 1.0, %v1635_v10  ;;  %v693_v23 = vadd.f32 %v3079_v29, %v3460_v35 }
 0x274   :  { %v1440_v58 = vadd.f32 %v1439_v41, %v1175_v36  ;;  %v1367_v6 = vadd.f32 %v1366_v32, %v1112_v7  ;;  %v696_v53 = vadd.f32 %v3079_v29, %v3461_v60  ;;  %v1395_v48 = vadd.f32 %v3071_v9, %v1135_v19 }
 0x275   :  { %v1473_v30 = vadd.f32 %v1472_v44, %v1203_v0  ;;  %v1137_v26 = vmax.f32 %v480_v20, 0.0  ;;  %v1138_v12 = vmax.f32 %v483_v46, 0.0  ;;  %v489_v9 = vadd.f32 %v3079_v29, %v3204_v43 }
 0x276   :  { %v3224_v27 = vpop.f32.mrf.mxu2  ;;  %v3226_v22 = vpop.f32.mrf.mxu3  ;;  %v1368_v39 = vadd.f32 %v1367_v6, %v1113_v45  ;;  %v1396_v41 = vadd.f32 %v1395_v48, %v1136_v42  ;;  %v1208_v32 = vmax.f32 %v693_v23, 0.0  ;;  %v855_v45 = vadd.f32 %v3079_v29, %v3129_v16 }
 0x277   :  { %v3228_v18 = vpop.f32.mrf.mxu0  ;;  %v683_v51 = vpop.f32.mrf.mxu1  ;;  %v1474_v5 = vadd.f32 %v1473_v30, %v1204_v3  ;;  %v1139_v44 = vmax.f32 %v486_v1, 0.0  ;;  %v858_v16 = vadd.f32 %v3079_v29, %v3149_v61  ;;  %v1140_v20 = vmax.f32 %v489_v9, 0.0 }
 0x278   :  { %v684_v37 = vadd.f32 %v3079_v29, %v683_v51  ;;  %v1441_v51 = vadd.f32 %v1440_v58, %v1176_v62  ;;  %v1369_v28 = vrot.slane %v1368_v39, 4  ;;  %v1209_v62 = vmax.f32 %v696_v53, 0.0  ;;  %v1649_v58 = vld [vmem:[%s3380_s3] sm:$0xff] }
 0x279   :  { %v1397_v15 = vadd.f32 %v1396_v41, %v1137_v26  ;;  %v492_v3 = vadd.f32 %v3079_v29, %v3228_v18  ;;  %1707 = vmatpush.msrb.mxu1 %v1649_v58  ;;  %v1262_v46 = vmax.f32 %v855_v45, 0.0  ;;  %v861_v53 = vadd.f32 %v3079_v29, %v3176_v13 }
 0x27a   :  { %v1205_v21 = vmax.f32 %v684_v37, 0.0  ;;  %v1442_v4 = vadd.f32 %v1441_v51, %v1177_v63  ;;  %v3297_v6 = vadd.f32 %v1369_v28, %v1368_v39  ;;  %v1050_v63 = vadd.f32 %v3079_v29, %v3131_v24 }
 0x27b   :  { %v1398_v19 = vadd.f32 %v1397_v15, %v1138_v12  ;;  %v1053_v24 = vadd.f32 %v3079_v29, %v3151_v47  ;;  %v1542_v1 = vadd.f32 %v3117_v55, %v1262_v46  ;;  %v1264_v12 = vmax.f32 %v861_v53, 0.0 }
 0x27c   :  { %v1475_v36 = vadd.f32 %v1474_v5, %v1205_v21  ;;  %v1443_v57 = vrot.slane %v1442_v4, 4  ;;  %v1327_v60 = vmax.f32 %v1050_v63, 0.0  ;;  %v1371_v48 = vrot.slane %v3297_v6, 2 }
 0x27d   :  { %v1399_v61 = vadd.f32 %v1398_v19, %v1139_v44  ;;  %v867_v55 = vadd.f32 %v3079_v29, %v3224_v27 }
 0x27e   :  { %v3253_v31 = vpop.f32.mrf.mxu2  ;;  %v3255_v49 = vpop.f32.mrf.mxu3  ;;  %v1444_v39 = vadd.f32 %v1443_v57, %v1442_v4  ;;  %v1056_v4 = vadd.f32 %v3079_v29, %v3178_v38 }
 0x27f   :  { %v3261_v54 = vpop.f32.mrf.mxu0  ;;  %v686_v14 = vpop.f32.mrf.mxu1  ;;  %v870_v15 = vadd.f32 %v3079_v29, %v3253_v31  ;;  %v1065_v44 = vadd.f32 %v3079_v29, %v3255_v49  ;;  %v1266_v19 = vmax.f32 %v867_v55, 0.0 }
 0x280   :  { %v687_v52 = vadd.f32 %v3079_v29, %v686_v14  ;;  %v1637_v14 = vmul.f32 %v3237_v2, %v1636_v59  ;;  %v495_v18 = vadd.f32 %v3079_v29, %v3261_v54  ;;  %v3463_v59 = vld [vmem:[#allocation44_spill] sm:$0xff]  ;;  %v1263_v54 = vmax.f32 %v858_v16, 0.0 }
 0x281   :  { %v1517_v42 = vrot.slane %v3463_v59, 4  ;;  %v1329_v9 = vmax.f32 %v1056_v4, 0.0  ;;  %v1267_v46 = vmax.f32 %v870_v15, 0.0 }
 0x282   :  { %v1206_v11 = vmax.f32 %v687_v52, 0.0  ;;  %v3300_v43 = vadd.f32 %v3237_v2, %v1637_v14  ;;  %v1142_v26 = vmax.f32 %v495_v18, 0.0  ;;  %v1617_v14 = vadd.f32 %v3119_v33, %v1327_v60 }
 0x283   :  { %v1518_v13 = vadd.f32 %v1517_v42, %v3463_v59  ;;  %v1543_v41 = vadd.f32 %v1542_v1, %v1263_v54 }
 0x284   :  { %v1476_v0 = vadd.f32 %v1475_v36, %v1206_v11  ;;  %v1141_v11 = vmax.f32 %v492_v3, 0.0  ;;  %v1328_v36 = vmax.f32 %v1053_v24, 0.0  ;;  %v1332_v24 = vmax.f32 %v1065_v44, 0.0 }
 0x285   :  { %v1519_v58 = vrot.slane %v1518_v13, 2  ;;  %v1544_v63 = vadd.f32 %v1543_v41, %v1264_v12 }
 0x286   :  { %v3271_v17 = vpop.f32.mrf.mxu2  ;;  %v3273_v25 = vpop.f32.mrf.mxu3 }
 0x287   :  { %v497_v10 = vpop.f32.mrf.mxu0  ;;  %v689_v56 = vpop.f32.mrf.mxu1  ;;  %v873_v42 = vadd.f32 %v3079_v29, %v3271_v17  ;;  %v1068_v49 = vadd.f32 %v3079_v29, %v3273_v25  ;;  %v1520_v54 = vadd.f32 %v1519_v58, %v1518_v13 }
 0x288   :  { %v690_v7 = vadd.f32 %v3079_v29, %v689_v56  ;;  %v498_v35 = vadd.f32 %v3079_v29, %v497_v10  ;;  %v1400_v56 = vadd.f32 %v1399_v61, %v1140_v20  ;;  %v864_v10 = vadd.f32 %v3079_v29, %v3196_v34 }
 0x289   :  { %v1268_v25 = vmax.f32 %v873_v42, 0.0  ;;  %v1273_v42 = vmax.f32 %v3285_v8, 0.0 }
 0x28a   :  { %v1207_v37 = vmax.f32 %v690_v7, 0.0  ;;  %v1059_v7 = vadd.f32 %v3079_v29, %v3198_v50  ;;  %v1401_v40 = vadd.f32 %v1400_v56, %v1141_v11  ;;  %v1143_v28 = vmax.f32 %v498_v35, 0.0 }
 0x28b   :  { %v1265_v57 = vmax.f32 %v864_v10, 0.0  ;;  %v1372_v11 = vadd.f32 %v1371_v48, %v3297_v6 }
 0x28c   :  { %v1477_v52 = vadd.f32 %v1476_v0, %v1207_v37  ;;  %v1062_v0 = vadd.f32 %v3079_v29, %v3226_v22  ;;  %v1402_v34 = vadd.f32 %v1401_v40, %v1142_v26  ;;  %v1330_v45 = vmax.f32 %v1059_v7, 0.0 }
 0x28d   :  { %v1445_v22 = vrot.slane %v1444_v39, 2  ;;  %v1545_v59 = vadd.f32 %v1544_v63, %v1265_v57  ;;  %v1373_v40 = vrot.slane %v1372_v11, 1 }
 0x28e   :  { %v1478_v30 = vadd.f32 %v1477_v52, %v1208_v32  ;;  %v3308_v21 = vpop.f32.mrf.mxu2  ;;  %v3310_v51 = vpop.f32.mrf.mxu3  ;;  %v1403_v3 = vadd.f32 %v1402_v34, %v1143_v28  ;;  %v1331_v20 = vmax.f32 %v1062_v0, 0.0  ;;  %v3357_v34 = vsel %vm1639_vm0, %v3237_v2, %v3300_v43 }
 0x28f   :  { %v500_v5 = vpop.f32.mrf.mxu0  ;;  %v1446_v35 = vadd.f32 %v1445_v22, %v1444_v39  ;;  %v1071_v60 = vadd.f32 %v3079_v29, %v3310_v51  ;;  %v1546_v53 = vadd.f32 %v1545_v59, %v1266_v19 }
 0x290   :  { %v1479_v23 = vadd.f32 %v1478_v30, %v1209_v62  ;;  %v501_v47 = vadd.f32 %v3079_v29, %v500_v5  ;;  %v1618_v62 = vadd.f32 %v1617_v14, %v1328_v36 }
 0x291   :  { %v1547_v6 = vadd.f32 %v1546_v53, %v1267_v46  ;;  %v1334_v7 = vmax.f32 %v1071_v60, 0.0  ;;  %v1447_v28 = vrot.slane %v1446_v35, 1 }
 0x292   :  { %v1480_v38 = vrot.slane %v1479_v23, 4  ;;  %v1144_v37 = vmax.f32 %v501_v47, 0.0  ;;  %v1619_v16 = vadd.f32 %v1618_v62, %v1329_v9  ;;  %v1333_v47 = vmax.f32 %v1068_v49, 0.0 }
 0x293   :  { %v1548_v12 = vadd.f32 %v1547_v6, %v1268_v25  ;;  %v1448_v44 = vadd.f32 %v1447_v28, %v1446_v35 }
 0x294   :  { %v1481_v52 = vadd.f32 %v1480_v38, %v1479_v23  ;;  %v1404_v18 = vadd.f32 %v1403_v3, %v1144_v37  ;;  %v1620_v31 = vadd.f32 %v1619_v16, %v1330_v45  ;;  %v876_v23 = vadd.f32 %v3079_v29, %v3308_v21  ;;  %v3464_v38 = vld [vmem:[#allocation43_spill] sm:$0xff] }
 0x295   :  { %v1591_v14 = vrot.slane %v3464_v38, 4  ;;  %v1521_v37 = vrot.slane %v1520_v54, 1 }
 0x296   :  { %v878_v32 = vpop.f32.mrf.mxu2  ;;  %v1073_v50 = vpop.f32.mrf.mxu3  ;;  %v1482_v5 = vrot.slane %v1481_v52, 2  ;;  %v1621_v4 = vadd.f32 %v1620_v31, %v1331_v20  ;;  %v1269_v21 = vmax.f32 %v876_v23, 0.0 }
 0x297   :  { %v503_v33 = vpop.f32.mrf.mxu0  ;;  %v879_v1 = vadd.f32 %v3079_v29, %v878_v32  ;;  %v1074_v36 = vadd.f32 %v3079_v29, %v1073_v50  ;;  %v1592_v3 = vadd.f32 %v1591_v14, %v3464_v38  ;;  %v1522_v43 = vadd.f32 %v1521_v37, %v1520_v54 }
 0x298   :  { %v504_v27 = vadd.f32 %v3079_v29, %v503_v33  ;;  %v1622_v39 = vadd.f32 %v1621_v4, %v1332_v24  ;;  %v1483_v48 = vadd.f32 %v1482_v5, %v1481_v52  ;;  %v1549_v62 = vadd.f32 %v1548_v12, %v1269_v21  ;;  %v1795_v12 = vld [vmem:[%s3381_s4] ss:$0 sm:$0xff]  ;;  %s1735_s4 = sshll.u32 %s3382_s5, 4  ;;  %s1736_s4 = int_to_ptr.hbm [resolvable:$true] %s1735_s4 }
 0x299   :  { %v1270_v55 = vmax.f32 %v879_v1, 0.0  ;;  %v1335_v0 = vmax.f32 %v1074_v36, 0.0  ;;  %v1374_v33 = vadd.f32 %v1373_v40, %v1372_v11  ;;  %v1643_v24 = vmul.f32 %v3357_v34, %v1448_v44 }
 0x29a   :  { %v1145_v30 = vmax.f32 %v504_v27, 0.0  ;;  %v1623_v9 = vadd.f32 %v1622_v39, %v1333_v47  ;;  %v1484_v32 = vrot.slane %v1483_v48, 1  ;;  %v1645_v23 = vmul.f32 %v3357_v34, %v1522_v43 }
 0x29b   :  { %v1550_v58 = vadd.f32 %v1549_v62, %v1270_v55  ;;  %v1641_v49 = vmul.f32 %v3357_v34, %v1374_v33 }
 0x29c   :  { %v1405_v61 = vadd.f32 %v1404_v18, %v1145_v30  ;;  %v1624_v57 = vadd.f32 %v1623_v9, %v1334_v7  ;;  %v1485_v19 = vadd.f32 %v1484_v32, %v1483_v48 }
 0x29e   :  { %v1406_v17 = vrot.slane %v1405_v61, 4  ;;  %v881_v56 = vpop.f32.mrf.mxu2  ;;  %v1076_v26 = vpop.f32.mrf.mxu3  ;;  %v1625_v63 = vadd.f32 %v1624_v57, %v1335_v0  ;;  %v1644_v11 = vmul.f32 %v3357_v34, %v1485_v19 }
 0x29f   :  { %v882_v51 = vadd.f32 %v3079_v29, %v881_v56  ;;  %v1077_v13 = vadd.f32 %v3079_v29, %v1076_v26 }
 0x2a0   :  { %v1407_v10 = vadd.f32 %v1406_v17, %v1405_v61 }
 0x2a1   :  { %v1271_v45 = vmax.f32 %v882_v51, 0.0  ;;  %v1336_v15 = vmax.f32 %v1077_v13, 0.0 }
 0x2a2   :  { %v1408_v41 = vrot.slane %v1407_v10, 2 }
 0x2a3   :  { %v1551_v18 = vadd.f32 %v1550_v58, %v1271_v45  ;;  %v1626_v30 = vadd.f32 %v1625_v63, %v1336_v15 }
 0x2a4   :  { %v1409_v50 = vadd.f32 %v1408_v41, %v1407_v10 }
 0x2a6   :  { %v1410_v52 = vrot.slane %v1409_v50, 1  ;;  %v884_v27 = vpop.f32.mrf.mxu2  ;;  %v1079_v22 = vpop.f32.mrf.mxu3 }
 0x2a7   :  { %v885_v16 = vadd.f32 %v3079_v29, %v884_v27  ;;  %v1080_v2 = vadd.f32 %v3079_v29, %v1079_v22  ;;  %v1593_v29 = vrot.slane %v1592_v3, 2 }
 0x2a8   :  { %v1411_v20 = vadd.f32 %v1410_v52, %v1409_v50 }
 0x2a9   :  { %v1272_v59 = vmax.f32 %v885_v16, 0.0  ;;  %v1337_v31 = vmax.f32 %v1080_v2, 0.0  ;;  %v1594_v26 = vadd.f32 %v1593_v29, %v1592_v3 }
 0x2aa   :  { %v1642_v46 = vmul.f32 %v3357_v34, %v1411_v20 }
 0x2ab   :  { %v1552_v5 = vadd.f32 %v1551_v18, %v1272_v59  ;;  %v1627_v61 = vadd.f32 %v1626_v30, %v1337_v31  ;;  %v1595_v6 = vrot.slane %v1594_v26, 1 }
 0x2ac   :  { %v1678_v35 = vsel %vm1677_vm1, %v1642_v46, %v1641_v49 }
 0x2ad   :  { %v1553_v60 = vadd.f32 %v1552_v5, %v1273_v42  ;;  %v1628_v54 = vrot.slane %v1627_v61, 4  ;;  %v1680_v8 = vsel %vm1679_vm2, %v1643_v24, %v1678_v35  ;;  %v1596_v21 = vadd.f32 %v1595_v6, %v1594_v26 }
 0x2ae   :  { %v1682_v53 = vsel %vm1681_vm3, %v1644_v11, %v1680_v8 }
 0x2af   :  { %v1554_v4 = vrot.slane %v1553_v60, 4  ;;  %v1629_v17 = vadd.f32 %v1628_v54, %v1627_v61  ;;  %v1684_v56 = vsel %vm1683_vm4, %v1645_v23, %v1682_v53  ;;  %v1647_v40 = vmul.f32 %v3357_v34, %v1596_v21 }
 0x2b1   :  { %v1555_v25 = vadd.f32 %v1554_v4, %v1553_v60  ;;  %v1630_v47 = vrot.slane %v1629_v17, 2 }
 0x2b3   :  { %v1556_v1 = vrot.slane %v1555_v25, 2  ;;  %v1631_v36 = vadd.f32 %v1630_v47, %v1629_v17 }
 0x2b5   :  { %v1557_v39 = vadd.f32 %v1556_v1, %v1555_v25  ;;  %v1632_v48 = vrot.slane %v1631_v36, 1 }
 0x2b7   :  { %v1558_v10 = vrot.slane %v1557_v39, 1  ;;  %v1633_v51 = vadd.f32 %v1632_v48, %v1631_v36 }
 0x2b9   :  { %v1559_v7 = vadd.f32 %v1558_v10, %v1557_v39  ;;  %v1648_v28 = vmul.f32 %v3357_v34, %v1633_v51 }
 0x2bb   :  { %v1646_v13 = vmul.f32 %v3357_v34, %v1559_v7 }
 0x2bd   :  { %v1686_v38 = vsel %vm1685_vm5, %v1646_v13, %v1684_v56 }
 0x2be   :  { %v1688_v14 = vsel %vm1687_vm6, %v1647_v40, %v1686_v38 }
 0x2bf   :  { %v1690_v41 = vsel %vm1689_vm7, %v1648_v28, %v1688_v14 }
 0x2c0   :  { %1708 = vmatmul.f32.vlgmr.msrb.gmra.mxu1 %v1690_v41 }
 0x33d   :  { %v1709_v9 = vpop.f32.mrf.mxu1 }
 0x33e   :  { %v1710_v55 = vadd.f32 %v1795_v12, %v1709_v9 }
 0x340   :  { %v1712_v0 = vmul.f32 %v1710_v55, %v1710_v55 }
 0x342   :  { %1713 = vadd.xlane.f32.xlu0 %v1712_v0 }
 0x3b5   :  { %v1714_v37 = vpop.xlane.xlu0 %1713 }
 0x3b6   :  { %v1715_v32 = vmax.f32 %v1714_v37, 1e-24 }
 0x3b8   :  { %1798 = vrsqrt.f32 %v1715_v32  ;;  %vm1722_vm9 = vweird.f32 %v1715_v32 }
 0x3be   :  { %v1799_v50 = vpop.eup %1798 }
 0x3bf   :  { %v1717_v62 = vmul.f32 %v1799_v50, %v1715_v32  ;;  %vm1723_vm8 = vweird.f32 %v1799_v50 }
 0x3c0   :  { %vm1724_vm10 = vmor %vm1722_vm9, %vm1723_vm8 }
 0x3c1   :  { %v1718_v57 = vmul.f32 %v1799_v50, %v1717_v62 }
 0x3c3   :  { %v1719_v45 = vmul.f32 0.5, %v1718_v57 }
 0x3c5   :  { %v1720_v34 = vsub.f32 1.5, %v1719_v45 }
 0x3c7   :  { %v1721_v15 = vmul.f32 %v1799_v50, %v1720_v34 }
 0x3c9   :  { %v1725_v33 = vsel %vm1724_vm10, %v1799_v50, %v1721_v15 }
 0x3ca   :  { %v1726_v44 = vmul.f32 %v1725_v33, %v1710_v55 }
 0x3cc   :  { %1727 = vst [vmem:[#allocation2] sm:$0xff] %v1726_v44 }
 0x3cd   :  { %1738 = dma.vmem_to_hbm [thread:$0]  %s1734_s29, 128, %s1736_s4, [#allocation3]  }
 0x3ce   :  { %1826 = dma.done.wait [#allocation3], 128  }
 0x3cf   :  { %1827 = vsyncadd [#allocation3], 4294967168 }
 0x3d0   :  { %1743 = vsyncpa [#allocation3], 1 }

</bundles_post_ra>
